<compile_context>
chip_gen: v7x
topology: tpu7x:2x2x1
jax: 0.10.0
libtpu: 0.0.40
codegen_flags: <defaults>
</compile_context>

<pallas_src>
import numpy as np
import jax
import jax.numpy as jnp
from jax.experimental import pallas as pl
from jax.experimental.pallas import tpu as pltpu


# -----------------------------------------------------------------------------
# Pallas kernel: embedding DMA-gather + input projection + skewed 2-layer LSTM
# recurrence + last-step select + classifier, all in one gridless invocation.
# -----------------------------------------------------------------------------
def textrnn_kernel(tok_ref,    # SMEM (B, T) int32 token ids
                   mask_ref,   # VMEM (B, T) int32 0/1 mask
                   emb_hbm,    # ANY  (V, D) f32 embedding table (stays in HBM)
                   wih0_ref,   # VMEM (D, 4H) f32  layer-0 input weights
                   b0_ref,     # VMEM (1, 4H) f32  layer-0 bias (b_ih + b_hh)
                   whh0_ref,   # VMEM (H, 4H) bf16 layer-0 recurrent weights
                   wih1_ref,   # VMEM (H, 4H) bf16 layer-1 input weights
                   whh1_ref,   # VMEM (H, 4H) bf16 layer-1 recurrent weights
                   b1_ref,     # VMEM (1, 4H) f32  layer-1 bias (b_ih + b_hh)
                   wc_ref,     # VMEM (H, C)  f32  classifier weight
                   bc_ref,     # VMEM (1, C)  f32  classifier bias
                   out_ref,    # VMEM (B, C)  f32  logits
                   gbuf,       # VMEM scratch (T*B, D) f32 gathered embeddings
                   sem):       # DMA semaphores (T*B,)
    B, T = tok_ref.shape
    H, G = whh0_ref.shape        # H, 4H

    # ---- Embedding gather: T*B single-row DMAs, all in flight together. ----
    # Row order t*B + b so step t's rows form a contiguous (B, D) block.
    copies = []
    for t in range(T):
        for b in range(B):
            i = t * B + b
            tok = tok_ref[b, t]                       # SMEM scalar read
            cp = pltpu.make_async_copy(
                emb_hbm.at[pl.ds(tok, 1), :],         # (1, D) row in HBM
                gbuf.at[pl.ds(i, 1), :],              # (1, D) row in VMEM
                sem.at[i])
            cp.start()
            copies.append(cp)

    # ---- Hoisted one-time reads / broadcasts (overlap the DMA latency). ----
    whh0 = whh0_ref[...]                              # (H, 4H) bf16
    wih1 = wih1_ref[...]                              # (H, 4H) bf16
    whh1 = whh1_ref[...]                              # (H, 4H) bf16
    b1 = jnp.broadcast_to(b1_ref[...], (B, G))        # (B, 4H) f32

    # Last valid step per example from the mask (all-padding rows wrap to
    # T-1, matching the reference's negative-index behaviour).
    lastf = jnp.sum(mask_ref[...].astype(jnp.float32), axis=1,
                    keepdims=True) - 1.0              # (B, 1)
    last = jnp.where(lastf < 0.0, float(T - 1), lastf).astype(jnp.int32)

    for cp in copies:
        cp.wait()

    # ---- Layer-0 input projection for all T*B rows, off the serial loop. ----
    # (T*B, D) @ (D, 4H) once, f32 operands (keeps the validated error budget).
    xproj = (jnp.dot(gbuf[...], wih0_ref[...],
                     preferred_element_type=jnp.float32)
             + b0_ref[...])                           # (T*B, 4H) f32

    def cell_update(gates, c):
        # Two full-width EUP pushes over the (B, 4H) gates; i/f/g/o sliced
        # afterwards (PyTorch gate order [i, f, g, o]).  All math in f32.
        sig = jax.nn.sigmoid(gates)
        th = jnp.tanh(gates)
        i = sig[:, 0 * H:1 * H]
        f = sig[:, 1 * H:2 * H]
        g = th[:, 2 * H:3 * H]
        o = sig[:, 3 * H:4 * H]
        c_new = f * c + i * g
        h_new = o * jnp.tanh(c_new)
        return h_new, c_new

    zeros = jnp.zeros((B, H), jnp.float32)
    h0, c0, h1, c1, final = zeros, zeros, zeros, zeros, zeros

    # Skewed recurrence: tick k = (layer-0 step k) + (layer-1 step k-1).
    # Both stages read only tick k-1 state, so their three small bf16 MXU
    # dots and their EUP pushes are mutually independent each tick.
    for k in range(T + 1):
        h0_bf = h0.astype(jnp.bfloat16)               # h0[k-1]
        h1_bf = h1.astype(jnp.bfloat16)               # h1[k-2]

        if k < T:        # layer 0, step k
            g0 = (xproj[k * B:(k + 1) * B, :]
                  + jnp.dot(h0_bf, whh0, preferred_element_type=jnp.float32))
        if k >= 1:       # layer 1, step k-1 (two accumulated dots, no concat)
            g1 = (jnp.dot(h0_bf, wih1, preferred_element_type=jnp.float32)
                  + jnp.dot(h1_bf, whh1, preferred_element_type=jnp.float32)
                  + b1)

        if k >= 1:
            h1, c1 = cell_update(g1, c1)
            final = jnp.where(last == (k - 1), h1, final)
        if k < T:
            h0, c0 = cell_update(g0, c0)

    # Classifier.  C=4 -> single lane-masked store, negligible.
    # TODO(synk): on v6e/v7x a bf16-operand classifier dot (or folding it into
    # the last tick's dots) is a small free win once tolerance is re-validated.
    out_ref[...] = (jnp.dot(final, wc_ref[...],
                            preferred_element_type=jnp.float32)
                    + bc_ref[...])


# -----------------------------------------------------------------------------
# One-time parameter packing (bf16 casts etc.) so the forward stays one launch.
# -----------------------------------------------------------------------------
def pack_params(params):
    return dict(
        embedding=params["embedding"],                  # (V, D) f32, kept in HBM
        wih0=params["wih0"],                            # (D, 4D) f32
        b0=params["b0"],                                # (1, 4D) f32
        whh0=params["whh0"].astype(jnp.bfloat16),       # (D, 4D) bf16
        wih1=params["wih1"].astype(jnp.bfloat16),       # (D, 4D) bf16
        whh1=params["whh1"].astype(jnp.bfloat16),       # (D, 4D) bf16
        b1=params["b1"],                                # (1, 4D) f32
        wc=params["wc"],                                # (D, C)  f32
        bc=params["bc"],                                # (1, C)  f32
    )


# -----------------------------------------------------------------------------
# Wrapper: a single pallas_call, nothing else on the dispatch path.
# -----------------------------------------------------------------------------
def textrnn_forward(X, masks, packed):
    """X, masks: (B, T) int32."""
    B, T = X.shape
    D = packed["wih0"].shape[0]
    C = packed["wc"].shape[1]

    smem = pl.BlockSpec(memory_space=pltpu.MemorySpace.SMEM)
    vmem = pl.BlockSpec(memory_space=pltpu.MemorySpace.VMEM)
    hbm = pl.BlockSpec(memory_space=pl.ANY)

    # TODO(synk): at production sizes, stream xproj along T with a grid axis
    # and only add a "parallel" batch axis (megacore split) once per-core M is
    # MXU-meaningful; at B=2/T=8 a single gridless invocation is the right
    # shape and splitting the latency-bound recurrence would only add overhead.
    return pl.pallas_call(
        textrnn_kernel,
        out_shape=jax.ShapeDtypeStruct((B, C), jnp.float32),
        in_specs=[smem, vmem, hbm,
                  vmem, vmem, vmem, vmem, vmem, vmem, vmem, vmem],
        out_specs=vmem,
        scratch_shapes=[pltpu.VMEM((T * B, D), jnp.float32),
                        pltpu.SemaphoreType.DMA((T * B,))],
    )(X, masks, packed["embedding"], packed["wih0"], packed["b0"],
      packed["whh0"], packed["wih1"], packed["whh1"], packed["b1"],
      packed["wc"], packed["bc"])


# -----------------------------------------------------------------------------
# Deterministic parameter construction (matches module shapes).
# -----------------------------------------------------------------------------
def make_params(key, vocab, D, C):
    ks = jax.random.split(key, 12)
    s = 1.0 / np.sqrt(D)

    emb = jax.random.normal(ks[0], (vocab, D), jnp.float32) * 0.02
    emb = emb.at[0].set(0.0)                        # padding_idx=0

    def u(k, shape):
        return jax.random.uniform(k, shape, jnp.float32, -s, s)

    # PyTorch LSTM weights: W_ih (4H, in), W_hh (4H, H); pre-transposed here.
    wih0 = u(ks[1], (D, 4 * D))
    whh0 = u(ks[2], (D, 4 * D))
    b0 = u(ks[3], (1, 4 * D)) + u(ks[4], (1, 4 * D))     # b_ih + b_hh
    wih1 = u(ks[5], (D, 4 * D))
    whh1 = u(ks[6], (D, 4 * D))
    b1 = u(ks[7], (1, 4 * D)) + u(ks[8], (1, 4 * D))

    # Classifier: xavier_uniform weight (C, D) -> stored transposed (D, C).
    bound = np.sqrt(6.0 / (D + C))
    wc = jax.random.uniform(ks[9], (D, C), jnp.float32, -bound, bound)
    bc = jnp.zeros((1, C), jnp.float32)

    return dict(embedding=emb, wih0=wih0, whh0=whh0, b0=b0,
                wih1=wih1, whh1=whh1, b1=b1, wc=wc, bc=bc)


# -----------------------------------------------------------------------------
# Pure-JAX f32 reference (mirrors the PyTorch forward) for correctness check.
# -----------------------------------------------------------------------------
def textrnn_reference(X, masks, params):
    B, T = X.shape
    D = params["embedding"].shape[1]
    embed = jnp.take(params["embedding"], X, axis=0)

    def cell(x, h, c, wih, whh, b):
        g = x @ wih + h @ whh + b
        i = jax.nn.sigmoid(g[:, 0 * D:1 * D])
        f = jax.nn.sigmoid(g[:, 1 * D:2 * D])
        gg = jnp.tanh(g[:, 2 * D:3 * D])
        o = jax.nn.sigmoid(g[:, 3 * D:4 * D])
        c_new = f * c + i * gg
        return o * jnp.tanh(c_new), c_new

    h0 = c0 = h1 = c1 = jnp.zeros((B, D), jnp.float32)
    outs = []
    for t in range(T):
        h0, c0 = cell(embed[:, t, :], h0, c0,
                      params["wih0"], params["whh0"], params["b0"])
        h1, c1 = cell(h0, h1, c1,
                      params["wih1"], params["whh1"], params["b1"])
        outs.append(h1)
    rnn_out = jnp.stack(outs, axis=1)               # (B, T, D)
    last = jnp.sum(masks, axis=1) - 1
    gathered = rnn_out[jnp.arange(B), last, :]
    return gathered @ params["wc"] + params["bc"]


if __name__ == "__main__":
    B, T, D, C = 2, 8, 32, 4
    VOCAB = 21128

    key = jax.random.PRNGKey(0)
    k_par, k_tok = jax.random.split(key)
    params = make_params(k_par, VOCAB, D, C)
    packed = pack_params(params)

    # Token ids with per-example lengths [5, 8]; padding token = 0.
    lengths = np.array([5, T], dtype=np.int32)
    toks = jax.random.randint(k_tok, (B, T), 1, VOCAB, dtype=jnp.int32)
    pos = np.arange(T)[None, :]
    masks = jnp.asarray((pos < lengths[:, None]).astype(np.int32))
    X = (toks * masks).astype(jnp.int32)            # zero out padded positions

    out = textrnn_forward(X, masks, packed)
    out = jax.block_until_ready(out)

    ref = textrnn_reference(X, masks, params)
    # Tolerance accounts for bf16 MXU operands in the recurrent matmuls
    # (f32 accumulation, f32 cell-state math), same budget as the previously
    # validated version.
    np.testing.assert_allclose(np.asarray(out), np.asarray(ref),
                               rtol=3e-2, atol=3e-2)

    print("KERNEL_OK")
</pallas_src>

<mosaic_0001>
module attributes {stable_mosaic.version = 11 : i64} {
  func.func @textrnn_kernel(%arg0: memref<2x8xi32, #tpu.memory_space<smem>>, %arg1: memref<2x8xi32, #tpu.memory_space<vmem>>, %arg2: memref<21128x32xf32, #tpu.memory_space<any>>, %arg3: memref<32x128xf32, #tpu.memory_space<vmem>>, %arg4: memref<1x128xf32, #tpu.memory_space<vmem>>, %arg5: memref<32x128xbf16, #tpu.memory_space<vmem>>, %arg6: memref<32x128xbf16, #tpu.memory_space<vmem>>, %arg7: memref<32x128xbf16, #tpu.memory_space<vmem>>, %arg8: memref<1x128xf32, #tpu.memory_space<vmem>>, %arg9: memref<32x4xf32, #tpu.memory_space<vmem>>, %arg10: memref<1x4xf32, #tpu.memory_space<vmem>>, %arg11: memref<2x4xf32, #tpu.memory_space<vmem>>, %arg12: memref<16x32xf32, #tpu.memory_space<vmem>>, %arg13: memref<16x!tpu.dma_semaphore, #tpu.memory_space<semaphore_mem>>) attributes {dimension_semantics = [], scalar_prefetch = 0 : i64, scratch_operands = 2 : i64, tpu.core_type = #tpu.core_type<tc>} {
    %c0 = arith.constant 0 : index
    %c0_0 = arith.constant 0 : index
    %0 = memref.load %arg0[%c0, %c0_0] : memref<2x8xi32, #tpu.memory_space<smem>>
    %c0_i32 = arith.constant 0 : i32
    %c0_i32_1 = arith.constant 0 : i32
    %1 = tpu.memref_slice %arg2[%0, %c0_i32_1] : memref<21128x32xf32, #tpu.memory_space<any>> -> memref<1x32xf32, #tpu.memory_space<any>>
    %c0_i32_2 = arith.constant 0 : i32
    %c0_i32_3 = arith.constant 0 : i32
    %2 = tpu.memref_slice %arg12[%c0_i32_2, %c0_i32_3] : memref<16x32xf32, #tpu.memory_space<vmem>> -> memref<1x32xf32, #tpu.memory_space<vmem>>
    %3 = tpu.memref_slice %arg13[%c0_i32] : memref<16x!tpu.dma_semaphore, #tpu.memory_space<semaphore_mem>> -> memref<1x!tpu.dma_semaphore, #tpu.memory_space<semaphore_mem>>
    %4 = tpu.memref_squeeze %3 : memref<1x!tpu.dma_semaphore, #tpu.memory_space<semaphore_mem>> -> memref<!tpu.dma_semaphore, #tpu.memory_space<semaphore_mem>>
    tpu.enqueue_dma source(%1 : memref<1x32xf32, #tpu.memory_space<any>>) target(%2 : memref<1x32xf32, #tpu.memory_space<vmem>>) target_semaphore(%4 : memref<!tpu.dma_semaphore, #tpu.memory_space<semaphore_mem>>)
    %c1 = arith.constant 1 : index
    %c0_4 = arith.constant 0 : index
    %5 = memref.load %arg0[%c1, %c0_4] : memref<2x8xi32, #tpu.memory_space<smem>>
    %c1_i32 = arith.constant 1 : i32
    %c0_i32_5 = arith.constant 0 : i32
    %6 = tpu.memref_slice %arg2[%5, %c0_i32_5] : memref<21128x32xf32, #tpu.memory_space<any>> -> memref<1x32xf32, #tpu.memory_space<any>>
    %c1_i32_6 = arith.constant 1 : i32
    %c0_i32_7 = arith.constant 0 : i32
    %7 = tpu.memref_slice %arg12[%c1_i32_6, %c0_i32_7] : memref<16x32xf32, #tpu.memory_space<vmem>> -> memref<1x32xf32, #tpu.memory_space<vmem>>
    %8 = tpu.memref_slice %arg13[%c1_i32] : memref<16x!tpu.dma_semaphore, #tpu.memory_space<semaphore_mem>> -> memref<1x!tpu.dma_semaphore, #tpu.memory_space<semaphore_mem>>
    %9 = tpu.memref_squeeze %8 : memref<1x!tpu.dma_semaphore, #tpu.memory_space<semaphore_mem>> -> memref<!tpu.dma_semaphore, #tpu.memory_space<semaphore_mem>>
    tpu.enqueue_dma source(%6 : memref<1x32xf32, #tpu.memory_space<any>>) target(%7 : memref<1x32xf32, #tpu.memory_space<vmem>>) target_semaphore(%9 : memref<!tpu.dma_semaphore, #tpu.memory_space<semaphore_mem>>)
    %c0_8 = arith.constant 0 : index
    %c1_9 = arith.constant 1 : index
    %10 = memref.load %arg0[%c0_8, %c1_9] : memref<2x8xi32, #tpu.memory_space<smem>>
    %c2_i32 = arith.constant 2 : i32
    %c0_i32_10 = arith.constant 0 : i32
    %11 = tpu.memref_slice %arg2[%10, %c0_i32_10] : memref<21128x32xf32, #tpu.memory_space<any>> -> memref<1x32xf32, #tpu.memory_space<any>>
    %c2_i32_11 = arith.constant 2 : i32
    %c0_i32_12 = arith.constant 0 : i32
    %12 = tpu.memref_slice %arg12[%c2_i32_11, %c0_i32_12] : memref<16x32xf32, #tpu.memory_space<vmem>> -> memref<1x32xf32, #tpu.memory_space<vmem>>
    %13 = tpu.memref_slice %arg13[%c2_i32] : memref<16x!tpu.dma_semaphore, #tpu.memory_space<semaphore_mem>> -> memref<1x!tpu.dma_semaphore, #tpu.memory_space<semaphore_mem>>
    %14 = tpu.memref_squeeze %13 : memref<1x!tpu.dma_semaphore, #tpu.memory_space<semaphore_mem>> -> memref<!tpu.dma_semaphore, #tpu.memory_space<semaphore_mem>>
    tpu.enqueue_dma source(%11 : memref<1x32xf32, #tpu.memory_space<any>>) target(%12 : memref<1x32xf32, #tpu.memory_space<vmem>>) target_semaphore(%14 : memref<!tpu.dma_semaphore, #tpu.memory_space<semaphore_mem>>)
    %c1_13 = arith.constant 1 : index
    %c1_14 = arith.constant 1 : index
    %15 = memref.load %arg0[%c1_13, %c1_14] : memref<2x8xi32, #tpu.memory_space<smem>>
    %c3_i32 = arith.constant 3 : i32
    %c0_i32_15 = arith.constant 0 : i32
    %16 = tpu.memref_slice %arg2[%15, %c0_i32_15] : memref<21128x32xf32, #tpu.memory_space<any>> -> memref<1x32xf32, #tpu.memory_space<any>>
    %c3_i32_16 = arith.constant 3 : i32
    %c0_i32_17 = arith.constant 0 : i32
    %17 = tpu.memref_slice %arg12[%c3_i32_16, %c0_i32_17] : memref<16x32xf32, #tpu.memory_space<vmem>> -> memref<1x32xf32, #tpu.memory_space<vmem>>
    %18 = tpu.memref_slice %arg13[%c3_i32] : memref<16x!tpu.dma_semaphore, #tpu.memory_space<semaphore_mem>> -> memref<1x!tpu.dma_semaphore, #tpu.memory_space<semaphore_mem>>
    %19 = tpu.memref_squeeze %18 : memref<1x!tpu.dma_semaphore, #tpu.memory_space<semaphore_mem>> -> memref<!tpu.dma_semaphore, #tpu.memory_space<semaphore_mem>>
    tpu.enqueue_dma source(%16 : memref<1x32xf32, #tpu.memory_space<any>>) target(%17 : memref<1x32xf32, #tpu.memory_space<vmem>>) target_semaphore(%19 : memref<!tpu.dma_semaphore, #tpu.memory_space<semaphore_mem>>)
    %c0_18 = arith.constant 0 : index
    %c2 = arith.constant 2 : index
    %20 = memref.load %arg0[%c0_18, %c2] : memref<2x8xi32, #tpu.memory_space<smem>>
    %c4_i32 = arith.constant 4 : i32
    %c0_i32_19 = arith.constant 0 : i32
    %21 = tpu.memref_slice %arg2[%20, %c0_i32_19] : memref<21128x32xf32, #tpu.memory_space<any>> -> memref<1x32xf32, #tpu.memory_space<any>>
    %c4_i32_20 = arith.constant 4 : i32
    %c0_i32_21 = arith.constant 0 : i32
    %22 = tpu.memref_slice %arg12[%c4_i32_20, %c0_i32_21] : memref<16x32xf32, #tpu.memory_space<vmem>> -> memref<1x32xf32, #tpu.memory_space<vmem>>
    %23 = tpu.memref_slice %arg13[%c4_i32] : memref<16x!tpu.dma_semaphore, #tpu.memory_space<semaphore_mem>> -> memref<1x!tpu.dma_semaphore, #tpu.memory_space<semaphore_mem>>
    %24 = tpu.memref_squeeze %23 : memref<1x!tpu.dma_semaphore, #tpu.memory_space<semaphore_mem>> -> memref<!tpu.dma_semaphore, #tpu.memory_space<semaphore_mem>>
    tpu.enqueue_dma source(%21 : memref<1x32xf32, #tpu.memory_space<any>>) target(%22 : memref<1x32xf32, #tpu.memory_space<vmem>>) target_semaphore(%24 : memref<!tpu.dma_semaphore, #tpu.memory_space<semaphore_mem>>)
    %c1_22 = arith.constant 1 : index
    %c2_23 = arith.constant 2 : index
    %25 = memref.load %arg0[%c1_22, %c2_23] : memref<2x8xi32, #tpu.memory_space<smem>>
    %c5_i32 = arith.constant 5 : i32
    %c0_i32_24 = arith.constant 0 : i32
    %26 = tpu.memref_slice %arg2[%25, %c0_i32_24] : memref<21128x32xf32, #tpu.memory_space<any>> -> memref<1x32xf32, #tpu.memory_space<any>>
    %c5_i32_25 = arith.constant 5 : i32
    %c0_i32_26 = arith.constant 0 : i32
    %27 = tpu.memref_slice %arg12[%c5_i32_25, %c0_i32_26] : memref<16x32xf32, #tpu.memory_space<vmem>> -> memref<1x32xf32, #tpu.memory_space<vmem>>
    %28 = tpu.memref_slice %arg13[%c5_i32] : memref<16x!tpu.dma_semaphore, #tpu.memory_space<semaphore_mem>> -> memref<1x!tpu.dma_semaphore, #tpu.memory_space<semaphore_mem>>
    %29 = tpu.memref_squeeze %28 : memref<1x!tpu.dma_semaphore, #tpu.memory_space<semaphore_mem>> -> memref<!tpu.dma_semaphore, #tpu.memory_space<semaphore_mem>>
    tpu.enqueue_dma source(%26 : memref<1x32xf32, #tpu.memory_space<any>>) target(%27 : memref<1x32xf32, #tpu.memory_space<vmem>>) target_semaphore(%29 : memref<!tpu.dma_semaphore, #tpu.memory_space<semaphore_mem>>)
    %c0_27 = arith.constant 0 : index
    %c3 = arith.constant 3 : index
    %30 = memref.load %arg0[%c0_27, %c3] : memref<2x8xi32, #tpu.memory_space<smem>>
    %c6_i32 = arith.constant 6 : i32
    %c0_i32_28 = arith.constant 0 : i32
    %31 = tpu.memref_slice %arg2[%30, %c0_i32_28] : memref<21128x32xf32, #tpu.memory_space<any>> -> memref<1x32xf32, #tpu.memory_space<any>>
    %c6_i32_29 = arith.constant 6 : i32
    %c0_i32_30 = arith.constant 0 : i32
    %32 = tpu.memref_slice %arg12[%c6_i32_29, %c0_i32_30] : memref<16x32xf32, #tpu.memory_space<vmem>> -> memref<1x32xf32, #tpu.memory_space<vmem>>
    %33 = tpu.memref_slice %arg13[%c6_i32] : memref<16x!tpu.dma_semaphore, #tpu.memory_space<semaphore_mem>> -> memref<1x!tpu.dma_semaphore, #tpu.memory_space<semaphore_mem>>
    %34 = tpu.memref_squeeze %33 : memref<1x!tpu.dma_semaphore, #tpu.memory_space<semaphore_mem>> -> memref<!tpu.dma_semaphore, #tpu.memory_space<semaphore_mem>>
    tpu.enqueue_dma source(%31 : memref<1x32xf32, #tpu.memory_space<any>>) target(%32 : memref<1x32xf32, #tpu.memory_space<vmem>>) target_semaphore(%34 : memref<!tpu.dma_semaphore, #tpu.memory_space<semaphore_mem>>)
    %c1_31 = arith.constant 1 : index
    %c3_32 = arith.constant 3 : index
    %35 = memref.load %arg0[%c1_31, %c3_32] : memref<2x8xi32, #tpu.memory_space<smem>>
    %c7_i32 = arith.constant 7 : i32
    %c0_i32_33 = arith.constant 0 : i32
    %36 = tpu.memref_slice %arg2[%35, %c0_i32_33] : memref<21128x32xf32, #tpu.memory_space<any>> -> memref<1x32xf32, #tpu.memory_space<any>>
    %c7_i32_34 = arith.constant 7 : i32
    %c0_i32_35 = arith.constant 0 : i32
    %37 = tpu.memref_slice %arg12[%c7_i32_34, %c0_i32_35] : memref<16x32xf32, #tpu.memory_space<vmem>> -> memref<1x32xf32, #tpu.memory_space<vmem>>
    %38 = tpu.memref_slice %arg13[%c7_i32] : memref<16x!tpu.dma_semaphore, #tpu.memory_space<semaphore_mem>> -> memref<1x!tpu.dma_semaphore, #tpu.memory_space<semaphore_mem>>
    %39 = tpu.memref_squeeze %38 : memref<1x!tpu.dma_semaphore, #tpu.memory_space<semaphore_mem>> -> memref<!tpu.dma_semaphore, #tpu.memory_space<semaphore_mem>>
    tpu.enqueue_dma source(%36 : memref<1x32xf32, #tpu.memory_space<any>>) target(%37 : memref<1x32xf32, #tpu.memory_space<vmem>>) target_semaphore(%39 : memref<!tpu.dma_semaphore, #tpu.memory_space<semaphore_mem>>)
    %c0_36 = arith.constant 0 : index
    %c4 = arith.constant 4 : index
    %40 = memref.load %arg0[%c0_36, %c4] : memref<2x8xi32, #tpu.memory_space<smem>>
    %c8_i32 = arith.constant 8 : i32
    %c0_i32_37 = arith.constant 0 : i32
    %41 = tpu.memref_slice %arg2[%40, %c0_i32_37] : memref<21128x32xf32, #tpu.memory_space<any>> -> memref<1x32xf32, #tpu.memory_space<any>>
    %c8_i32_38 = arith.constant 8 : i32
    %c0_i32_39 = arith.constant 0 : i32
    %42 = tpu.memref_slice %arg12[%c8_i32_38, %c0_i32_39] : memref<16x32xf32, #tpu.memory_space<vmem>> -> memref<1x32xf32, #tpu.memory_space<vmem>>
    %43 = tpu.memref_slice %arg13[%c8_i32] : memref<16x!tpu.dma_semaphore, #tpu.memory_space<semaphore_mem>> -> memref<1x!tpu.dma_semaphore, #tpu.memory_space<semaphore_mem>>
    %44 = tpu.memref_squeeze %43 : memref<1x!tpu.dma_semaphore, #tpu.memory_space<semaphore_mem>> -> memref<!tpu.dma_semaphore, #tpu.memory_space<semaphore_mem>>
    tpu.enqueue_dma source(%41 : memref<1x32xf32, #tpu.memory_space<any>>) target(%42 : memref<1x32xf32, #tpu.memory_space<vmem>>) target_semaphore(%44 : memref<!tpu.dma_semaphore, #tpu.memory_space<semaphore_mem>>)
    %c1_40 = arith.constant 1 : index
    %c4_41 = arith.constant 4 : index
    %45 = memref.load %arg0[%c1_40, %c4_41] : memref<2x8xi32, #tpu.memory_space<smem>>
    %c9_i32 = arith.constant 9 : i32
    %c0_i32_42 = arith.constant 0 : i32
    %46 = tpu.memref_slice %arg2[%45, %c0_i32_42] : memref<21128x32xf32, #tpu.memory_space<any>> -> memref<1x32xf32, #tpu.memory_space<any>>
    %c9_i32_43 = arith.constant 9 : i32
    %c0_i32_44 = arith.constant 0 : i32
    %47 = tpu.memref_slice %arg12[%c9_i32_43, %c0_i32_44] : memref<16x32xf32, #tpu.memory_space<vmem>> -> memref<1x32xf32, #tpu.memory_space<vmem>>
    %48 = tpu.memref_slice %arg13[%c9_i32] : memref<16x!tpu.dma_semaphore, #tpu.memory_space<semaphore_mem>> -> memref<1x!tpu.dma_semaphore, #tpu.memory_space<semaphore_mem>>
    %49 = tpu.memref_squeeze %48 : memref<1x!tpu.dma_semaphore, #tpu.memory_space<semaphore_mem>> -> memref<!tpu.dma_semaphore, #tpu.memory_space<semaphore_mem>>
    tpu.enqueue_dma source(%46 : memref<1x32xf32, #tpu.memory_space<any>>) target(%47 : memref<1x32xf32, #tpu.memory_space<vmem>>) target_semaphore(%49 : memref<!tpu.dma_semaphore, #tpu.memory_space<semaphore_mem>>)
    %c0_45 = arith.constant 0 : index
    %c5 = arith.constant 5 : index
    %50 = memref.load %arg0[%c0_45, %c5] : memref<2x8xi32, #tpu.memory_space<smem>>
    %c10_i32 = arith.constant 10 : i32
    %c0_i32_46 = arith.constant 0 : i32
    %51 = tpu.memref_slice %arg2[%50, %c0_i32_46] : memref<21128x32xf32, #tpu.memory_space<any>> -> memref<1x32xf32, #tpu.memory_space<any>>
    %c10_i32_47 = arith.constant 10 : i32
    %c0_i32_48 = arith.constant 0 : i32
    %52 = tpu.memref_slice %arg12[%c10_i32_47, %c0_i32_48] : memref<16x32xf32, #tpu.memory_space<vmem>> -> memref<1x32xf32, #tpu.memory_space<vmem>>
    %53 = tpu.memref_slice %arg13[%c10_i32] : memref<16x!tpu.dma_semaphore, #tpu.memory_space<semaphore_mem>> -> memref<1x!tpu.dma_semaphore, #tpu.memory_space<semaphore_mem>>
    %54 = tpu.memref_squeeze %53 : memref<1x!tpu.dma_semaphore, #tpu.memory_space<semaphore_mem>> -> memref<!tpu.dma_semaphore, #tpu.memory_space<semaphore_mem>>
    tpu.enqueue_dma source(%51 : memref<1x32xf32, #tpu.memory_space<any>>) target(%52 : memref<1x32xf32, #tpu.memory_space<vmem>>) target_semaphore(%54 : memref<!tpu.dma_semaphore, #tpu.memory_space<semaphore_mem>>)
    %c1_49 = arith.constant 1 : index
    %c5_50 = arith.constant 5 : index
    %55 = memref.load %arg0[%c1_49, %c5_50] : memref<2x8xi32, #tpu.memory_space<smem>>
    %c11_i32 = arith.constant 11 : i32
    %c0_i32_51 = arith.constant 0 : i32
    %56 = tpu.memref_slice %arg2[%55, %c0_i32_51] : memref<21128x32xf32, #tpu.memory_space<any>> -> memref<1x32xf32, #tpu.memory_space<any>>
    %c11_i32_52 = arith.constant 11 : i32
    %c0_i32_53 = arith.constant 0 : i32
    %57 = tpu.memref_slice %arg12[%c11_i32_52, %c0_i32_53] : memref<16x32xf32, #tpu.memory_space<vmem>> -> memref<1x32xf32, #tpu.memory_space<vmem>>
    %58 = tpu.memref_slice %arg13[%c11_i32] : memref<16x!tpu.dma_semaphore, #tpu.memory_space<semaphore_mem>> -> memref<1x!tpu.dma_semaphore, #tpu.memory_space<semaphore_mem>>
    %59 = tpu.memref_squeeze %58 : memref<1x!tpu.dma_semaphore, #tpu.memory_space<semaphore_mem>> -> memref<!tpu.dma_semaphore, #tpu.memory_space<semaphore_mem>>
    tpu.enqueue_dma source(%56 : memref<1x32xf32, #tpu.memory_space<any>>) target(%57 : memref<1x32xf32, #tpu.memory_space<vmem>>) target_semaphore(%59 : memref<!tpu.dma_semaphore, #tpu.memory_space<semaphore_mem>>)
    %c0_54 = arith.constant 0 : index
    %c6 = arith.constant 6 : index
    %60 = memref.load %arg0[%c0_54, %c6] : memref<2x8xi32, #tpu.memory_space<smem>>
    %c12_i32 = arith.constant 12 : i32
    %c0_i32_55 = arith.constant 0 : i32
    %61 = tpu.memref_slice %arg2[%60, %c0_i32_55] : memref<21128x32xf32, #tpu.memory_space<any>> -> memref<1x32xf32, #tpu.memory_space<any>>
    %c12_i32_56 = arith.constant 12 : i32
    %c0_i32_57 = arith.constant 0 : i32
    %62 = tpu.memref_slice %arg12[%c12_i32_56, %c0_i32_57] : memref<16x32xf32, #tpu.memory_space<vmem>> -> memref<1x32xf32, #tpu.memory_space<vmem>>
    %63 = tpu.memref_slice %arg13[%c12_i32] : memref<16x!tpu.dma_semaphore, #tpu.memory_space<semaphore_mem>> -> memref<1x!tpu.dma_semaphore, #tpu.memory_space<semaphore_mem>>
    %64 = tpu.memref_squeeze %63 : memref<1x!tpu.dma_semaphore, #tpu.memory_space<semaphore_mem>> -> memref<!tpu.dma_semaphore, #tpu.memory_space<semaphore_mem>>
    tpu.enqueue_dma source(%61 : memref<1x32xf32, #tpu.memory_space<any>>) target(%62 : memref<1x32xf32, #tpu.memory_space<vmem>>) target_semaphore(%64 : memref<!tpu.dma_semaphore, #tpu.memory_space<semaphore_mem>>)
    %c1_58 = arith.constant 1 : index
    %c6_59 = arith.constant 6 : index
    %65 = memref.load %arg0[%c1_58, %c6_59] : memref<2x8xi32, #tpu.memory_space<smem>>
    %c13_i32 = arith.constant 13 : i32
    %c0_i32_60 = arith.constant 0 : i32
    %66 = tpu.memref_slice %arg2[%65, %c0_i32_60] : memref<21128x32xf32, #tpu.memory_space<any>> -> memref<1x32xf32, #tpu.memory_space<any>>
    %c13_i32_61 = arith.constant 13 : i32
    %c0_i32_62 = arith.constant 0 : i32
    %67 = tpu.memref_slice %arg12[%c13_i32_61, %c0_i32_62] : memref<16x32xf32, #tpu.memory_space<vmem>> -> memref<1x32xf32, #tpu.memory_space<vmem>>
    %68 = tpu.memref_slice %arg13[%c13_i32] : memref<16x!tpu.dma_semaphore, #tpu.memory_space<semaphore_mem>> -> memref<1x!tpu.dma_semaphore, #tpu.memory_space<semaphore_mem>>
    %69 = tpu.memref_squeeze %68 : memref<1x!tpu.dma_semaphore, #tpu.memory_space<semaphore_mem>> -> memref<!tpu.dma_semaphore, #tpu.memory_space<semaphore_mem>>
    tpu.enqueue_dma source(%66 : memref<1x32xf32, #tpu.memory_space<any>>) target(%67 : memref<1x32xf32, #tpu.memory_space<vmem>>) target_semaphore(%69 : memref<!tpu.dma_semaphore, #tpu.memory_space<semaphore_mem>>)
    %c0_63 = arith.constant 0 : index
    %c7 = arith.constant 7 : index
    %70 = memref.load %arg0[%c0_63, %c7] : memref<2x8xi32, #tpu.memory_space<smem>>
    %c14_i32 = arith.constant 14 : i32
    %c0_i32_64 = arith.constant 0 : i32
    %71 = tpu.memref_slice %arg2[%70, %c0_i32_64] : memref<21128x32xf32, #tpu.memory_space<any>> -> memref<1x32xf32, #tpu.memory_space<any>>
    %c14_i32_65 = arith.constant 14 : i32
    %c0_i32_66 = arith.constant 0 : i32
    %72 = tpu.memref_slice %arg12[%c14_i32_65, %c0_i32_66] : memref<16x32xf32, #tpu.memory_space<vmem>> -> memref<1x32xf32, #tpu.memory_space<vmem>>
    %73 = tpu.memref_slice %arg13[%c14_i32] : memref<16x!tpu.dma_semaphore, #tpu.memory_space<semaphore_mem>> -> memref<1x!tpu.dma_semaphore, #tpu.memory_space<semaphore_mem>>
    %74 = tpu.memref_squeeze %73 : memref<1x!tpu.dma_semaphore, #tpu.memory_space<semaphore_mem>> -> memref<!tpu.dma_semaphore, #tpu.memory_space<semaphore_mem>>
    tpu.enqueue_dma source(%71 : memref<1x32xf32, #tpu.memory_space<any>>) target(%72 : memref<1x32xf32, #tpu.memory_space<vmem>>) target_semaphore(%74 : memref<!tpu.dma_semaphore, #tpu.memory_space<semaphore_mem>>)
    %c1_67 = arith.constant 1 : index
    %c7_68 = arith.constant 7 : index
    %75 = memref.load %arg0[%c1_67, %c7_68] : memref<2x8xi32, #tpu.memory_space<smem>>
    %c15_i32 = arith.constant 15 : i32
    %c0_i32_69 = arith.constant 0 : i32
    %76 = tpu.memref_slice %arg2[%75, %c0_i32_69] : memref<21128x32xf32, #tpu.memory_space<any>> -> memref<1x32xf32, #tpu.memory_space<any>>
    %c15_i32_70 = arith.constant 15 : i32
    %c0_i32_71 = arith.constant 0 : i32
    %77 = tpu.memref_slice %arg12[%c15_i32_70, %c0_i32_71] : memref<16x32xf32, #tpu.memory_space<vmem>> -> memref<1x32xf32, #tpu.memory_space<vmem>>
    %78 = tpu.memref_slice %arg13[%c15_i32] : memref<16x!tpu.dma_semaphore, #tpu.memory_space<semaphore_mem>> -> memref<1x!tpu.dma_semaphore, #tpu.memory_space<semaphore_mem>>
    %79 = tpu.memref_squeeze %78 : memref<1x!tpu.dma_semaphore, #tpu.memory_space<semaphore_mem>> -> memref<!tpu.dma_semaphore, #tpu.memory_space<semaphore_mem>>
    tpu.enqueue_dma source(%76 : memref<1x32xf32, #tpu.memory_space<any>>) target(%77 : memref<1x32xf32, #tpu.memory_space<vmem>>) target_semaphore(%79 : memref<!tpu.dma_semaphore, #tpu.memory_space<semaphore_mem>>)
    %c0_72 = arith.constant 0 : index
    %c0_73 = arith.constant 0 : index
    %80 = vector.load %arg5[%c0_72, %c0_73] : memref<32x128xbf16, #tpu.memory_space<vmem>>, vector<32x128xbf16>
    %c0_74 = arith.constant 0 : index
    %c0_75 = arith.constant 0 : index
    %81 = vector.load %arg6[%c0_74, %c0_75] : memref<32x128xbf16, #tpu.memory_space<vmem>>, vector<32x128xbf16>
    %c0_76 = arith.constant 0 : index
    %c0_77 = arith.constant 0 : index
    %82 = vector.load %arg7[%c0_76, %c0_77] : memref<32x128xbf16, #tpu.memory_space<vmem>>, vector<32x128xbf16>
    %c0_78 = arith.constant 0 : index
    %c0_79 = arith.constant 0 : index
    %83 = vector.load %arg8[%c0_78, %c0_79] : memref<1x128xf32, #tpu.memory_space<vmem>>, vector<1x128xf32>
    %84 = vector.shape_cast %83 : vector<1x128xf32> to vector<1x128xf32>
    %85 = vector.broadcast %84 : vector<1x128xf32> to vector<2x128xf32>
    %c0_80 = arith.constant 0 : index
    %c0_81 = arith.constant 0 : index
    %86 = vector.load %arg1[%c0_80, %c0_81] : memref<2x8xi32, #tpu.memory_space<vmem>>, vector<2x8xi32>
    %87 = arith.sitofp %86 : vector<2x8xi32> to vector<2x8xf32>
    %cst = arith.constant dense<0.000000e+00> : vector<2xf32>
    %88 = vector.multi_reduction <add>, %87, %cst [1] : vector<2x8xf32> to vector<2xf32>
    %89 = vector.shape_cast %88 : vector<2xf32> to vector<2x1xf32>
    %cst_82 = arith.constant 1.000000e+00 : f32
    %90 = vector.broadcast %cst_82 : f32 to vector<2x1xf32>
    %91 = arith.subf %89, %90 : vector<2x1xf32>
    %cst_83 = arith.constant 0.000000e+00 : f32
    %92 = vector.broadcast %cst_83 : f32 to vector<2x1xf32>
    %93 = arith.cmpf olt, %91, %92 : vector<2x1xf32>
    %cst_84 = arith.constant 7.000000e+00 : f32
    %94 = vector.broadcast %cst_84 : f32 to vector<2x1xf32>
    %95 = arith.select %93, %94, %91 : vector<2x1xi1>, vector<2x1xf32>
    %96 = arith.fptosi %95 : vector<2x1xf32> to vector<2x1xi32>
    %c0_i32_85 = arith.constant 0 : i32
    %c0_i32_86 = arith.constant 0 : i32
    %97 = tpu.memref_slice %arg2[%0, %c0_i32_86] : memref<21128x32xf32, #tpu.memory_space<any>> -> memref<1x32xf32, #tpu.memory_space<any>>
    %c0_i32_87 = arith.constant 0 : i32
    %c0_i32_88 = arith.constant 0 : i32
    %98 = tpu.memref_slice %arg12[%c0_i32_87, %c0_i32_88] : memref<16x32xf32, #tpu.memory_space<vmem>> -> memref<1x32xf32, #tpu.memory_space<vmem>>
    %99 = tpu.memref_slice %arg13[%c0_i32_85] : memref<16x!tpu.dma_semaphore, #tpu.memory_space<semaphore_mem>> -> memref<1x!tpu.dma_semaphore, #tpu.memory_space<semaphore_mem>>
    %100 = tpu.memref_squeeze %99 : memref<1x!tpu.dma_semaphore, #tpu.memory_space<semaphore_mem>> -> memref<!tpu.dma_semaphore, #tpu.memory_space<semaphore_mem>>
    tpu.wait_dma2 semaphore(%100 : memref<!tpu.dma_semaphore, #tpu.memory_space<semaphore_mem>>) src(%97 : memref<1x32xf32, #tpu.memory_space<any>>) dst(%98 : memref<1x32xf32, #tpu.memory_space<vmem>>)
    %c1_i32_89 = arith.constant 1 : i32
    %c0_i32_90 = arith.constant 0 : i32
    %101 = tpu.memref_slice %arg2[%5, %c0_i32_90] : memref<21128x32xf32, #tpu.memory_space<any>> -> memref<1x32xf32, #tpu.memory_space<any>>
    %c1_i32_91 = arith.constant 1 : i32
    %c0_i32_92 = arith.constant 0 : i32
    %102 = tpu.memref_slice %arg12[%c1_i32_91, %c0_i32_92] : memref<16x32xf32, #tpu.memory_space<vmem>> -> memref<1x32xf32, #tpu.memory_space<vmem>>
    %103 = tpu.memref_slice %arg13[%c1_i32_89] : memref<16x!tpu.dma_semaphore, #tpu.memory_space<semaphore_mem>> -> memref<1x!tpu.dma_semaphore, #tpu.memory_space<semaphore_mem>>
    %104 = tpu.memref_squeeze %103 : memref<1x!tpu.dma_semaphore, #tpu.memory_space<semaphore_mem>> -> memref<!tpu.dma_semaphore, #tpu.memory_space<semaphore_mem>>
    tpu.wait_dma2 semaphore(%104 : memref<!tpu.dma_semaphore, #tpu.memory_space<semaphore_mem>>) src(%101 : memref<1x32xf32, #tpu.memory_space<any>>) dst(%102 : memref<1x32xf32, #tpu.memory_space<vmem>>)
    %c2_i32_93 = arith.constant 2 : i32
    %c0_i32_94 = arith.constant 0 : i32
    %105 = tpu.memref_slice %arg2[%10, %c0_i32_94] : memref<21128x32xf32, #tpu.memory_space<any>> -> memref<1x32xf32, #tpu.memory_space<any>>
    %c2_i32_95 = arith.constant 2 : i32
    %c0_i32_96 = arith.constant 0 : i32
    %106 = tpu.memref_slice %arg12[%c2_i32_95, %c0_i32_96] : memref<16x32xf32, #tpu.memory_space<vmem>> -> memref<1x32xf32, #tpu.memory_space<vmem>>
    %107 = tpu.memref_slice %arg13[%c2_i32_93] : memref<16x!tpu.dma_semaphore, #tpu.memory_space<semaphore_mem>> -> memref<1x!tpu.dma_semaphore, #tpu.memory_space<semaphore_mem>>
    %108 = tpu.memref_squeeze %107 : memref<1x!tpu.dma_semaphore, #tpu.memory_space<semaphore_mem>> -> memref<!tpu.dma_semaphore, #tpu.memory_space<semaphore_mem>>
    tpu.wait_dma2 semaphore(%108 : memref<!tpu.dma_semaphore, #tpu.memory_space<semaphore_mem>>) src(%105 : memref<1x32xf32, #tpu.memory_space<any>>) dst(%106 : memref<1x32xf32, #tpu.memory_space<vmem>>)
    %c3_i32_97 = arith.constant 3 : i32
    %c0_i32_98 = arith.constant 0 : i32
    %109 = tpu.memref_slice %arg2[%15, %c0_i32_98] : memref<21128x32xf32, #tpu.memory_space<any>> -> memref<1x32xf32, #tpu.memory_space<any>>
    %c3_i32_99 = arith.constant 3 : i32
    %c0_i32_100 = arith.constant 0 : i32
    %110 = tpu.memref_slice %arg12[%c3_i32_99, %c0_i32_100] : memref<16x32xf32, #tpu.memory_space<vmem>> -> memref<1x32xf32, #tpu.memory_space<vmem>>
    %111 = tpu.memref_slice %arg13[%c3_i32_97] : memref<16x!tpu.dma_semaphore, #tpu.memory_space<semaphore_mem>> -> memref<1x!tpu.dma_semaphore, #tpu.memory_space<semaphore_mem>>
    %112 = tpu.memref_squeeze %111 : memref<1x!tpu.dma_semaphore, #tpu.memory_space<semaphore_mem>> -> memref<!tpu.dma_semaphore, #tpu.memory_space<semaphore_mem>>
    tpu.wait_dma2 semaphore(%112 : memref<!tpu.dma_semaphore, #tpu.memory_space<semaphore_mem>>) src(%109 : memref<1x32xf32, #tpu.memory_space<any>>) dst(%110 : memref<1x32xf32, #tpu.memory_space<vmem>>)
    %c4_i32_101 = arith.constant 4 : i32
    %c0_i32_102 = arith.constant 0 : i32
    %113 = tpu.memref_slice %arg2[%20, %c0_i32_102] : memref<21128x32xf32, #tpu.memory_space<any>> -> memref<1x32xf32, #tpu.memory_space<any>>
    %c4_i32_103 = arith.constant 4 : i32
    %c0_i32_104 = arith.constant 0 : i32
    %114 = tpu.memref_slice %arg12[%c4_i32_103, %c0_i32_104] : memref<16x32xf32, #tpu.memory_space<vmem>> -> memref<1x32xf32, #tpu.memory_space<vmem>>
    %115 = tpu.memref_slice %arg13[%c4_i32_101] : memref<16x!tpu.dma_semaphore, #tpu.memory_space<semaphore_mem>> -> memref<1x!tpu.dma_semaphore, #tpu.memory_space<semaphore_mem>>
    %116 = tpu.memref_squeeze %115 : memref<1x!tpu.dma_semaphore, #tpu.memory_space<semaphore_mem>> -> memref<!tpu.dma_semaphore, #tpu.memory_space<semaphore_mem>>
    tpu.wait_dma2 semaphore(%116 : memref<!tpu.dma_semaphore, #tpu.memory_space<semaphore_mem>>) src(%113 : memref<1x32xf32, #tpu.memory_space<any>>) dst(%114 : memref<1x32xf32, #tpu.memory_space<vmem>>)
    %c5_i32_105 = arith.constant 5 : i32
    %c0_i32_106 = arith.constant 0 : i32
    %117 = tpu.memref_slice %arg2[%25, %c0_i32_106] : memref<21128x32xf32, #tpu.memory_space<any>> -> memref<1x32xf32, #tpu.memory_space<any>>
    %c5_i32_107 = arith.constant 5 : i32
    %c0_i32_108 = arith.constant 0 : i32
    %118 = tpu.memref_slice %arg12[%c5_i32_107, %c0_i32_108] : memref<16x32xf32, #tpu.memory_space<vmem>> -> memref<1x32xf32, #tpu.memory_space<vmem>>
    %119 = tpu.memref_slice %arg13[%c5_i32_105] : memref<16x!tpu.dma_semaphore, #tpu.memory_space<semaphore_mem>> -> memref<1x!tpu.dma_semaphore, #tpu.memory_space<semaphore_mem>>
    %120 = tpu.memref_squeeze %119 : memref<1x!tpu.dma_semaphore, #tpu.memory_space<semaphore_mem>> -> memref<!tpu.dma_semaphore, #tpu.memory_space<semaphore_mem>>
    tpu.wait_dma2 semaphore(%120 : memref<!tpu.dma_semaphore, #tpu.memory_space<semaphore_mem>>) src(%117 : memref<1x32xf32, #tpu.memory_space<any>>) dst(%118 : memref<1x32xf32, #tpu.memory_space<vmem>>)
    %c6_i32_109 = arith.constant 6 : i32
    %c0_i32_110 = arith.constant 0 : i32
    %121 = tpu.memref_slice %arg2[%30, %c0_i32_110] : memref<21128x32xf32, #tpu.memory_space<any>> -> memref<1x32xf32, #tpu.memory_space<any>>
    %c6_i32_111 = arith.constant 6 : i32
    %c0_i32_112 = arith.constant 0 : i32
    %122 = tpu.memref_slice %arg12[%c6_i32_111, %c0_i32_112] : memref<16x32xf32, #tpu.memory_space<vmem>> -> memref<1x32xf32, #tpu.memory_space<vmem>>
    %123 = tpu.memref_slice %arg13[%c6_i32_109] : memref<16x!tpu.dma_semaphore, #tpu.memory_space<semaphore_mem>> -> memref<1x!tpu.dma_semaphore, #tpu.memory_space<semaphore_mem>>
    %124 = tpu.memref_squeeze %123 : memref<1x!tpu.dma_semaphore, #tpu.memory_space<semaphore_mem>> -> memref<!tpu.dma_semaphore, #tpu.memory_space<semaphore_mem>>
    tpu.wait_dma2 semaphore(%124 : memref<!tpu.dma_semaphore, #tpu.memory_space<semaphore_mem>>) src(%121 : memref<1x32xf32, #tpu.memory_space<any>>) dst(%122 : memref<1x32xf32, #tpu.memory_space<vmem>>)
    %c7_i32_113 = arith.constant 7 : i32
    %c0_i32_114 = arith.constant 0 : i32
    %125 = tpu.memref_slice %arg2[%35, %c0_i32_114] : memref<21128x32xf32, #tpu.memory_space<any>> -> memref<1x32xf32, #tpu.memory_space<any>>
    %c7_i32_115 = arith.constant 7 : i32
    %c0_i32_116 = arith.constant 0 : i32
    %126 = tpu.memref_slice %arg12[%c7_i32_115, %c0_i32_116] : memref<16x32xf32, #tpu.memory_space<vmem>> -> memref<1x32xf32, #tpu.memory_space<vmem>>
    %127 = tpu.memref_slice %arg13[%c7_i32_113] : memref<16x!tpu.dma_semaphore, #tpu.memory_space<semaphore_mem>> -> memref<1x!tpu.dma_semaphore, #tpu.memory_space<semaphore_mem>>
    %128 = tpu.memref_squeeze %127 : memref<1x!tpu.dma_semaphore, #tpu.memory_space<semaphore_mem>> -> memref<!tpu.dma_semaphore, #tpu.memory_space<semaphore_mem>>
    tpu.wait_dma2 semaphore(%128 : memref<!tpu.dma_semaphore, #tpu.memory_space<semaphore_mem>>) src(%125 : memref<1x32xf32, #tpu.memory_space<any>>) dst(%126 : memref<1x32xf32, #tpu.memory_space<vmem>>)
    %c8_i32_117 = arith.constant 8 : i32
    %c0_i32_118 = arith.constant 0 : i32
    %129 = tpu.memref_slice %arg2[%40, %c0_i32_118] : memref<21128x32xf32, #tpu.memory_space<any>> -> memref<1x32xf32, #tpu.memory_space<any>>
    %c8_i32_119 = arith.constant 8 : i32
    %c0_i32_120 = arith.constant 0 : i32
    %130 = tpu.memref_slice %arg12[%c8_i32_119, %c0_i32_120] : memref<16x32xf32, #tpu.memory_space<vmem>> -> memref<1x32xf32, #tpu.memory_space<vmem>>
    %131 = tpu.memref_slice %arg13[%c8_i32_117] : memref<16x!tpu.dma_semaphore, #tpu.memory_space<semaphore_mem>> -> memref<1x!tpu.dma_semaphore, #tpu.memory_space<semaphore_mem>>
    %132 = tpu.memref_squeeze %131 : memref<1x!tpu.dma_semaphore, #tpu.memory_space<semaphore_mem>> -> memref<!tpu.dma_semaphore, #tpu.memory_space<semaphore_mem>>
    tpu.wait_dma2 semaphore(%132 : memref<!tpu.dma_semaphore, #tpu.memory_space<semaphore_mem>>) src(%129 : memref<1x32xf32, #tpu.memory_space<any>>) dst(%130 : memref<1x32xf32, #tpu.memory_space<vmem>>)
    %c9_i32_121 = arith.constant 9 : i32
    %c0_i32_122 = arith.constant 0 : i32
    %133 = tpu.memref_slice %arg2[%45, %c0_i32_122] : memref<21128x32xf32, #tpu.memory_space<any>> -> memref<1x32xf32, #tpu.memory_space<any>>
    %c9_i32_123 = arith.constant 9 : i32
    %c0_i32_124 = arith.constant 0 : i32
    %134 = tpu.memref_slice %arg12[%c9_i32_123, %c0_i32_124] : memref<16x32xf32, #tpu.memory_space<vmem>> -> memref<1x32xf32, #tpu.memory_space<vmem>>
    %135 = tpu.memref_slice %arg13[%c9_i32_121] : memref<16x!tpu.dma_semaphore, #tpu.memory_space<semaphore_mem>> -> memref<1x!tpu.dma_semaphore, #tpu.memory_space<semaphore_mem>>
    %136 = tpu.memref_squeeze %135 : memref<1x!tpu.dma_semaphore, #tpu.memory_space<semaphore_mem>> -> memref<!tpu.dma_semaphore, #tpu.memory_space<semaphore_mem>>
    tpu.wait_dma2 semaphore(%136 : memref<!tpu.dma_semaphore, #tpu.memory_space<semaphore_mem>>) src(%133 : memref<1x32xf32, #tpu.memory_space<any>>) dst(%134 : memref<1x32xf32, #tpu.memory_space<vmem>>)
    %c10_i32_125 = arith.constant 10 : i32
    %c0_i32_126 = arith.constant 0 : i32
    %137 = tpu.memref_slice %arg2[%50, %c0_i32_126] : memref<21128x32xf32, #tpu.memory_space<any>> -> memref<1x32xf32, #tpu.memory_space<any>>
    %c10_i32_127 = arith.constant 10 : i32
    %c0_i32_128 = arith.constant 0 : i32
    %138 = tpu.memref_slice %arg12[%c10_i32_127, %c0_i32_128] : memref<16x32xf32, #tpu.memory_space<vmem>> -> memref<1x32xf32, #tpu.memory_space<vmem>>
    %139 = tpu.memref_slice %arg13[%c10_i32_125] : memref<16x!tpu.dma_semaphore, #tpu.memory_space<semaphore_mem>> -> memref<1x!tpu.dma_semaphore, #tpu.memory_space<semaphore_mem>>
    %140 = tpu.memref_squeeze %139 : memref<1x!tpu.dma_semaphore, #tpu.memory_space<semaphore_mem>> -> memref<!tpu.dma_semaphore, #tpu.memory_space<semaphore_mem>>
    tpu.wait_dma2 semaphore(%140 : memref<!tpu.dma_semaphore, #tpu.memory_space<semaphore_mem>>) src(%137 : memref<1x32xf32, #tpu.memory_space<any>>) dst(%138 : memref<1x32xf32, #tpu.memory_space<vmem>>)
    %c11_i32_129 = arith.constant 11 : i32
    %c0_i32_130 = arith.constant 0 : i32
    %141 = tpu.memref_slice %arg2[%55, %c0_i32_130] : memref<21128x32xf32, #tpu.memory_space<any>> -> memref<1x32xf32, #tpu.memory_space<any>>
    %c11_i32_131 = arith.constant 11 : i32
    %c0_i32_132 = arith.constant 0 : i32
    %142 = tpu.memref_slice %arg12[%c11_i32_131, %c0_i32_132] : memref<16x32xf32, #tpu.memory_space<vmem>> -> memref<1x32xf32, #tpu.memory_space<vmem>>
    %143 = tpu.memref_slice %arg13[%c11_i32_129] : memref<16x!tpu.dma_semaphore, #tpu.memory_space<semaphore_mem>> -> memref<1x!tpu.dma_semaphore, #tpu.memory_space<semaphore_mem>>
    %144 = tpu.memref_squeeze %143 : memref<1x!tpu.dma_semaphore, #tpu.memory_space<semaphore_mem>> -> memref<!tpu.dma_semaphore, #tpu.memory_space<semaphore_mem>>
    tpu.wait_dma2 semaphore(%144 : memref<!tpu.dma_semaphore, #tpu.memory_space<semaphore_mem>>) src(%141 : memref<1x32xf32, #tpu.memory_space<any>>) dst(%142 : memref<1x32xf32, #tpu.memory_space<vmem>>)
    %c12_i32_133 = arith.constant 12 : i32
    %c0_i32_134 = arith.constant 0 : i32
    %145 = tpu.memref_slice %arg2[%60, %c0_i32_134] : memref<21128x32xf32, #tpu.memory_space<any>> -> memref<1x32xf32, #tpu.memory_space<any>>
    %c12_i32_135 = arith.constant 12 : i32
    %c0_i32_136 = arith.constant 0 : i32
    %146 = tpu.memref_slice %arg12[%c12_i32_135, %c0_i32_136] : memref<16x32xf32, #tpu.memory_space<vmem>> -> memref<1x32xf32, #tpu.memory_space<vmem>>
    %147 = tpu.memref_slice %arg13[%c12_i32_133] : memref<16x!tpu.dma_semaphore, #tpu.memory_space<semaphore_mem>> -> memref<1x!tpu.dma_semaphore, #tpu.memory_space<semaphore_mem>>
    %148 = tpu.memref_squeeze %147 : memref<1x!tpu.dma_semaphore, #tpu.memory_space<semaphore_mem>> -> memref<!tpu.dma_semaphore, #tpu.memory_space<semaphore_mem>>
    tpu.wait_dma2 semaphore(%148 : memref<!tpu.dma_semaphore, #tpu.memory_space<semaphore_mem>>) src(%145 : memref<1x32xf32, #tpu.memory_space<any>>) dst(%146 : memref<1x32xf32, #tpu.memory_space<vmem>>)
    %c13_i32_137 = arith.constant 13 : i32
    %c0_i32_138 = arith.constant 0 : i32
    %149 = tpu.memref_slice %arg2[%65, %c0_i32_138] : memref<21128x32xf32, #tpu.memory_space<any>> -> memref<1x32xf32, #tpu.memory_space<any>>
    %c13_i32_139 = arith.constant 13 : i32
    %c0_i32_140 = arith.constant 0 : i32
    %150 = tpu.memref_slice %arg12[%c13_i32_139, %c0_i32_140] : memref<16x32xf32, #tpu.memory_space<vmem>> -> memref<1x32xf32, #tpu.memory_space<vmem>>
    %151 = tpu.memref_slice %arg13[%c13_i32_137] : memref<16x!tpu.dma_semaphore, #tpu.memory_space<semaphore_mem>> -> memref<1x!tpu.dma_semaphore, #tpu.memory_space<semaphore_mem>>
    %152 = tpu.memref_squeeze %151 : memref<1x!tpu.dma_semaphore, #tpu.memory_space<semaphore_mem>> -> memref<!tpu.dma_semaphore, #tpu.memory_space<semaphore_mem>>
    tpu.wait_dma2 semaphore(%152 : memref<!tpu.dma_semaphore, #tpu.memory_space<semaphore_mem>>) src(%149 : memref<1x32xf32, #tpu.memory_space<any>>) dst(%150 : memref<1x32xf32, #tpu.memory_space<vmem>>)
    %c14_i32_141 = arith.constant 14 : i32
    %c0_i32_142 = arith.constant 0 : i32
    %153 = tpu.memref_slice %arg2[%70, %c0_i32_142] : memref<21128x32xf32, #tpu.memory_space<any>> -> memref<1x32xf32, #tpu.memory_space<any>>
    %c14_i32_143 = arith.constant 14 : i32
    %c0_i32_144 = arith.constant 0 : i32
    %154 = tpu.memref_slice %arg12[%c14_i32_143, %c0_i32_144] : memref<16x32xf32, #tpu.memory_space<vmem>> -> memref<1x32xf32, #tpu.memory_space<vmem>>
    %155 = tpu.memref_slice %arg13[%c14_i32_141] : memref<16x!tpu.dma_semaphore, #tpu.memory_space<semaphore_mem>> -> memref<1x!tpu.dma_semaphore, #tpu.memory_space<semaphore_mem>>
    %156 = tpu.memref_squeeze %155 : memref<1x!tpu.dma_semaphore, #tpu.memory_space<semaphore_mem>> -> memref<!tpu.dma_semaphore, #tpu.memory_space<semaphore_mem>>
    tpu.wait_dma2 semaphore(%156 : memref<!tpu.dma_semaphore, #tpu.memory_space<semaphore_mem>>) src(%153 : memref<1x32xf32, #tpu.memory_space<any>>) dst(%154 : memref<1x32xf32, #tpu.memory_space<vmem>>)
    %c15_i32_145 = arith.constant 15 : i32
    %c0_i32_146 = arith.constant 0 : i32
    %157 = tpu.memref_slice %arg2[%75, %c0_i32_146] : memref<21128x32xf32, #tpu.memory_space<any>> -> memref<1x32xf32, #tpu.memory_space<any>>
    %c15_i32_147 = arith.constant 15 : i32
    %c0_i32_148 = arith.constant 0 : i32
    %158 = tpu.memref_slice %arg12[%c15_i32_147, %c0_i32_148] : memref<16x32xf32, #tpu.memory_space<vmem>> -> memref<1x32xf32, #tpu.memory_space<vmem>>
    %159 = tpu.memref_slice %arg13[%c15_i32_145] : memref<16x!tpu.dma_semaphore, #tpu.memory_space<semaphore_mem>> -> memref<1x!tpu.dma_semaphore, #tpu.memory_space<semaphore_mem>>
    %160 = tpu.memref_squeeze %159 : memref<1x!tpu.dma_semaphore, #tpu.memory_space<semaphore_mem>> -> memref<!tpu.dma_semaphore, #tpu.memory_space<semaphore_mem>>
    tpu.wait_dma2 semaphore(%160 : memref<!tpu.dma_semaphore, #tpu.memory_space<semaphore_mem>>) src(%157 : memref<1x32xf32, #tpu.memory_space<any>>) dst(%158 : memref<1x32xf32, #tpu.memory_space<vmem>>)
    %c0_149 = arith.constant 0 : index
    %c0_150 = arith.constant 0 : index
    %161 = vector.load %arg12[%c0_149, %c0_150] : memref<16x32xf32, #tpu.memory_space<vmem>>, vector<16x32xf32>
    %c0_151 = arith.constant 0 : index
    %c0_152 = arith.constant 0 : index
    %162 = vector.load %arg3[%c0_151, %c0_152] : memref<32x128xf32, #tpu.memory_space<vmem>>, vector<32x128xf32>
    %cst_153 = arith.constant dense<0.000000e+00> : vector<16x128xf32>
    %163 = tpu.matmul %161, %162, %cst_153 {dimension_numbers = #tpu.dot_dimension_numbers<[1], [0], [0], [1], [0, 0, 1, 1], [], []>} : vector<16x32xf32>, vector<32x128xf32>, vector<16x128xf32> -> vector<16x128xf32>
    %c0_154 = arith.constant 0 : index
    %c0_155 = arith.constant 0 : index
    %164 = vector.load %arg4[%c0_154, %c0_155] : memref<1x128xf32, #tpu.memory_space<vmem>>, vector<1x128xf32>
    %165 = vector.broadcast %164 : vector<1x128xf32> to vector<16x128xf32>
    %166 = arith.addf %163, %165 : vector<16x128xf32>
    %cst_156 = arith.constant 0.000000e+00 : f32
    %167 = vector.broadcast %cst_156 : f32 to vector<2x32xf32>
    %168 = arith.truncf %167 : vector<2x32xf32> to vector<2x32xbf16>
    %169 = vector.extract_strided_slice %166 {offsets = [0, 0], sizes = [2, 128], strides = [1, 1]} : vector<16x128xf32> to vector<2x128xf32>
    %cst_157 = arith.constant dense<0.000000e+00> : vector<2x128xf32>
    %170 = tpu.matmul %168, %80, %cst_157 {dimension_numbers = #tpu.dot_dimension_numbers<[1], [0], [0], [1], [0, 0, 1, 1], [], []>} : vector<2x32xbf16>, vector<32x128xbf16>, vector<2x128xf32> -> vector<2x128xf32>
    %171 = arith.addf %169, %170 : vector<2x128xf32>
    %172 = arith.negf %171 : vector<2x128xf32>
    %173 = math.exp %172 : vector<2x128xf32>
    %cst_158 = arith.constant 1.000000e+00 : f32
    %174 = vector.broadcast %cst_158 : f32 to vector<2x128xf32>
    %175 = arith.addf %174, %173 : vector<2x128xf32>
    %176 = arith.divf %174, %175 : vector<2x128xf32>
    %177 = math.tanh %171 : vector<2x128xf32>
    %178 = vector.extract_strided_slice %176 {offsets = [0, 0], sizes = [2, 32], strides = [1, 1]} : vector<2x128xf32> to vector<2x32xf32>
    %179 = vector.extract_strided_slice %176 {offsets = [0, 32], sizes = [2, 32], strides = [1, 1]} : vector<2x128xf32> to vector<2x32xf32>
    %180 = vector.extract_strided_slice %177 {offsets = [0, 64], sizes = [2, 32], strides = [1, 1]} : vector<2x128xf32> to vector<2x32xf32>
    %181 = vector.extract_strided_slice %176 {offsets = [0, 96], sizes = [2, 32], strides = [1, 1]} : vector<2x128xf32> to vector<2x32xf32>
    %182 = arith.mulf %179, %167 : vector<2x32xf32>
    %183 = arith.mulf %178, %180 : vector<2x32xf32>
    %184 = arith.addf %182, %183 : vector<2x32xf32>
    %185 = math.tanh %184 : vector<2x32xf32>
    %186 = arith.mulf %181, %185 : vector<2x32xf32>
    %187 = arith.truncf %186 : vector<2x32xf32> to vector<2x32xbf16>
    %188 = arith.truncf %167 : vector<2x32xf32> to vector<2x32xbf16>
    %189 = vector.extract_strided_slice %166 {offsets = [2, 0], sizes = [2, 128], strides = [1, 1]} : vector<16x128xf32> to vector<2x128xf32>
    %cst_159 = arith.constant dense<0.000000e+00> : vector<2x128xf32>
    %190 = tpu.matmul %187, %80, %cst_159 {dimension_numbers = #tpu.dot_dimension_numbers<[1], [0], [0], [1], [0, 0, 1, 1], [], []>} : vector<2x32xbf16>, vector<32x128xbf16>, vector<2x128xf32> -> vector<2x128xf32>
    %191 = arith.addf %189, %190 : vector<2x128xf32>
    %cst_160 = arith.constant dense<0.000000e+00> : vector<2x128xf32>
    %192 = tpu.matmul %187, %81, %cst_160 {dimension_numbers = #tpu.dot_dimension_numbers<[1], [0], [0], [1], [0, 0, 1, 1], [], []>} : vector<2x32xbf16>, vector<32x128xbf16>, vector<2x128xf32> -> vector<2x128xf32>
    %cst_161 = arith.constant dense<0.000000e+00> : vector<2x128xf32>
    %193 = tpu.matmul %188, %82, %cst_161 {dimension_numbers = #tpu.dot_dimension_numbers<[1], [0], [0], [1], [0, 0, 1, 1], [], []>} : vector<2x32xbf16>, vector<32x128xbf16>, vector<2x128xf32> -> vector<2x128xf32>
    %194 = arith.addf %192, %193 : vector<2x128xf32>
    %195 = arith.addf %194, %85 : vector<2x128xf32>
    %196 = arith.negf %195 : vector<2x128xf32>
    %197 = math.exp %196 : vector<2x128xf32>
    %cst_162 = arith.constant 1.000000e+00 : f32
    %198 = vector.broadcast %cst_162 : f32 to vector<2x128xf32>
    %199 = arith.addf %198, %197 : vector<2x128xf32>
    %200 = arith.divf %198, %199 : vector<2x128xf32>
    %201 = math.tanh %195 : vector<2x128xf32>
    %202 = vector.extract_strided_slice %200 {offsets = [0, 0], sizes = [2, 32], strides = [1, 1]} : vector<2x128xf32> to vector<2x32xf32>
    %203 = vector.extract_strided_slice %200 {offsets = [0, 32], sizes = [2, 32], strides = [1, 1]} : vector<2x128xf32> to vector<2x32xf32>
    %204 = vector.extract_strided_slice %201 {offsets = [0, 64], sizes = [2, 32], strides = [1, 1]} : vector<2x128xf32> to vector<2x32xf32>
    %205 = vector.extract_strided_slice %200 {offsets = [0, 96], sizes = [2, 32], strides = [1, 1]} : vector<2x128xf32> to vector<2x32xf32>
    %206 = arith.mulf %203, %167 : vector<2x32xf32>
    %207 = arith.mulf %202, %204 : vector<2x32xf32>
    %208 = arith.addf %206, %207 : vector<2x32xf32>
    %209 = math.tanh %208 : vector<2x32xf32>
    %210 = arith.mulf %205, %209 : vector<2x32xf32>
    %c0_i32_163 = arith.constant 0 : i32
    %211 = vector.broadcast %c0_i32_163 : i32 to vector<2x1xi32>
    %212 = arith.cmpi eq, %96, %211 : vector<2x1xi32>
    %213 = vector.shape_cast %212 : vector<2x1xi1> to vector<2x1xi1>
    %214 = vector.broadcast %213 : vector<2x1xi1> to vector<2x32xi1>
    %215 = arith.select %214, %210, %167 : vector<2x32xi1>, vector<2x32xf32>
    %216 = arith.negf %191 : vector<2x128xf32>
    %217 = math.exp %216 : vector<2x128xf32>
    %cst_164 = arith.constant 1.000000e+00 : f32
    %218 = vector.broadcast %cst_164 : f32 to vector<2x128xf32>
    %219 = arith.addf %218, %217 : vector<2x128xf32>
    %220 = arith.divf %218, %219 : vector<2x128xf32>
    %221 = math.tanh %191 : vector<2x128xf32>
    %222 = vector.extract_strided_slice %220 {offsets = [0, 0], sizes = [2, 32], strides = [1, 1]} : vector<2x128xf32> to vector<2x32xf32>
    %223 = vector.extract_strided_slice %220 {offsets = [0, 32], sizes = [2, 32], strides = [1, 1]} : vector<2x128xf32> to vector<2x32xf32>
    %224 = vector.extract_strided_slice %221 {offsets = [0, 64], sizes = [2, 32], strides = [1, 1]} : vector<2x128xf32> to vector<2x32xf32>
    %225 = vector.extract_strided_slice %220 {offsets = [0, 96], sizes = [2, 32], strides = [1, 1]} : vector<2x128xf32> to vector<2x32xf32>
    %226 = arith.mulf %223, %184 : vector<2x32xf32>
    %227 = arith.mulf %222, %224 : vector<2x32xf32>
    %228 = arith.addf %226, %227 : vector<2x32xf32>
    %229 = math.tanh %228 : vector<2x32xf32>
    %230 = arith.mulf %225, %229 : vector<2x32xf32>
    %231 = arith.truncf %230 : vector<2x32xf32> to vector<2x32xbf16>
    %232 = arith.truncf %210 : vector<2x32xf32> to vector<2x32xbf16>
    %233 = vector.extract_strided_slice %166 {offsets = [4, 0], sizes = [2, 128], strides = [1, 1]} : vector<16x128xf32> to vector<2x128xf32>
    %cst_165 = arith.constant dense<0.000000e+00> : vector<2x128xf32>
    %234 = tpu.matmul %231, %80, %cst_165 {dimension_numbers = #tpu.dot_dimension_numbers<[1], [0], [0], [1], [0, 0, 1, 1], [], []>} : vector<2x32xbf16>, vector<32x128xbf16>, vector<2x128xf32> -> vector<2x128xf32>
    %235 = arith.addf %233, %234 : vector<2x128xf32>
    %cst_166 = arith.constant dense<0.000000e+00> : vector<2x128xf32>
    %236 = tpu.matmul %231, %81, %cst_166 {dimension_numbers = #tpu.dot_dimension_numbers<[1], [0], [0], [1], [0, 0, 1, 1], [], []>} : vector<2x32xbf16>, vector<32x128xbf16>, vector<2x128xf32> -> vector<2x128xf32>
    %cst_167 = arith.constant dense<0.000000e+00> : vector<2x128xf32>
    %237 = tpu.matmul %232, %82, %cst_167 {dimension_numbers = #tpu.dot_dimension_numbers<[1], [0], [0], [1], [0, 0, 1, 1], [], []>} : vector<2x32xbf16>, vector<32x128xbf16>, vector<2x128xf32> -> vector<2x128xf32>
    %238 = arith.addf %236, %237 : vector<2x128xf32>
    %239 = arith.addf %238, %85 : vector<2x128xf32>
    %240 = arith.negf %239 : vector<2x128xf32>
    %241 = math.exp %240 : vector<2x128xf32>
    %cst_168 = arith.constant 1.000000e+00 : f32
    %242 = vector.broadcast %cst_168 : f32 to vector<2x128xf32>
    %243 = arith.addf %242, %241 : vector<2x128xf32>
    %244 = arith.divf %242, %243 : vector<2x128xf32>
    %245 = math.tanh %239 : vector<2x128xf32>
    %246 = vector.extract_strided_slice %244 {offsets = [0, 0], sizes = [2, 32], strides = [1, 1]} : vector<2x128xf32> to vector<2x32xf32>
    %247 = vector.extract_strided_slice %244 {offsets = [0, 32], sizes = [2, 32], strides = [1, 1]} : vector<2x128xf32> to vector<2x32xf32>
    %248 = vector.extract_strided_slice %245 {offsets = [0, 64], sizes = [2, 32], strides = [1, 1]} : vector<2x128xf32> to vector<2x32xf32>
    %249 = vector.extract_strided_slice %244 {offsets = [0, 96], sizes = [2, 32], strides = [1, 1]} : vector<2x128xf32> to vector<2x32xf32>
    %250 = arith.mulf %247, %208 : vector<2x32xf32>
    %251 = arith.mulf %246, %248 : vector<2x32xf32>
    %252 = arith.addf %250, %251 : vector<2x32xf32>
    %253 = math.tanh %252 : vector<2x32xf32>
    %254 = arith.mulf %249, %253 : vector<2x32xf32>
    %c1_i32_169 = arith.constant 1 : i32
    %255 = vector.broadcast %c1_i32_169 : i32 to vector<2x1xi32>
    %256 = arith.cmpi eq, %96, %255 : vector<2x1xi32>
    %257 = vector.shape_cast %256 : vector<2x1xi1> to vector<2x1xi1>
    %258 = vector.broadcast %257 : vector<2x1xi1> to vector<2x32xi1>
    %259 = arith.select %258, %254, %215 : vector<2x32xi1>, vector<2x32xf32>
    %260 = arith.negf %235 : vector<2x128xf32>
    %261 = math.exp %260 : vector<2x128xf32>
    %cst_170 = arith.constant 1.000000e+00 : f32
    %262 = vector.broadcast %cst_170 : f32 to vector<2x128xf32>
    %263 = arith.addf %262, %261 : vector<2x128xf32>
    %264 = arith.divf %262, %263 : vector<2x128xf32>
    %265 = math.tanh %235 : vector<2x128xf32>
    %266 = vector.extract_strided_slice %264 {offsets = [0, 0], sizes = [2, 32], strides = [1, 1]} : vector<2x128xf32> to vector<2x32xf32>
    %267 = vector.extract_strided_slice %264 {offsets = [0, 32], sizes = [2, 32], strides = [1, 1]} : vector<2x128xf32> to vector<2x32xf32>
    %268 = vector.extract_strided_slice %265 {offsets = [0, 64], sizes = [2, 32], strides = [1, 1]} : vector<2x128xf32> to vector<2x32xf32>
    %269 = vector.extract_strided_slice %264 {offsets = [0, 96], sizes = [2, 32], strides = [1, 1]} : vector<2x128xf32> to vector<2x32xf32>
    %270 = arith.mulf %267, %228 : vector<2x32xf32>
    %271 = arith.mulf %266, %268 : vector<2x32xf32>
    %272 = arith.addf %270, %271 : vector<2x32xf32>
    %273 = math.tanh %272 : vector<2x32xf32>
    %274 = arith.mulf %269, %273 : vector<2x32xf32>
    %275 = arith.truncf %274 : vector<2x32xf32> to vector<2x32xbf16>
    %276 = arith.truncf %254 : vector<2x32xf32> to vector<2x32xbf16>
    %277 = vector.extract_strided_slice %166 {offsets = [6, 0], sizes = [2, 128], strides = [1, 1]} : vector<16x128xf32> to vector<2x128xf32>
    %cst_171 = arith.constant dense<0.000000e+00> : vector<2x128xf32>
    %278 = tpu.matmul %275, %80, %cst_171 {dimension_numbers = #tpu.dot_dimension_numbers<[1], [0], [0], [1], [0, 0, 1, 1], [], []>} : vector<2x32xbf16>, vector<32x128xbf16>, vector<2x128xf32> -> vector<2x128xf32>
    %279 = arith.addf %277, %278 : vector<2x128xf32>
    %cst_172 = arith.constant dense<0.000000e+00> : vector<2x128xf32>
    %280 = tpu.matmul %275, %81, %cst_172 {dimension_numbers = #tpu.dot_dimension_numbers<[1], [0], [0], [1], [0, 0, 1, 1], [], []>} : vector<2x32xbf16>, vector<32x128xbf16>, vector<2x128xf32> -> vector<2x128xf32>
    %cst_173 = arith.constant dense<0.000000e+00> : vector<2x128xf32>
    %281 = tpu.matmul %276, %82, %cst_173 {dimension_numbers = #tpu.dot_dimension_numbers<[1], [0], [0], [1], [0, 0, 1, 1], [], []>} : vector<2x32xbf16>, vector<32x128xbf16>, vector<2x128xf32> -> vector<2x128xf32>
    %282 = arith.addf %280, %281 : vector<2x128xf32>
    %283 = arith.addf %282, %85 : vector<2x128xf32>
    %284 = arith.negf %283 : vector<2x128xf32>
    %285 = math.exp %284 : vector<2x128xf32>
    %cst_174 = arith.constant 1.000000e+00 : f32
    %286 = vector.broadcast %cst_174 : f32 to vector<2x128xf32>
    %287 = arith.addf %286, %285 : vector<2x128xf32>
    %288 = arith.divf %286, %287 : vector<2x128xf32>
    %289 = math.tanh %283 : vector<2x128xf32>
    %290 = vector.extract_strided_slice %288 {offsets = [0, 0], sizes = [2, 32], strides = [1, 1]} : vector<2x128xf32> to vector<2x32xf32>
    %291 = vector.extract_strided_slice %288 {offsets = [0, 32], sizes = [2, 32], strides = [1, 1]} : vector<2x128xf32> to vector<2x32xf32>
    %292 = vector.extract_strided_slice %289 {offsets = [0, 64], sizes = [2, 32], strides = [1, 1]} : vector<2x128xf32> to vector<2x32xf32>
    %293 = vector.extract_strided_slice %288 {offsets = [0, 96], sizes = [2, 32], strides = [1, 1]} : vector<2x128xf32> to vector<2x32xf32>
    %294 = arith.mulf %291, %252 : vector<2x32xf32>
    %295 = arith.mulf %290, %292 : vector<2x32xf32>
    %296 = arith.addf %294, %295 : vector<2x32xf32>
    %297 = math.tanh %296 : vector<2x32xf32>
    %298 = arith.mulf %293, %297 : vector<2x32xf32>
    %c2_i32_175 = arith.constant 2 : i32
    %299 = vector.broadcast %c2_i32_175 : i32 to vector<2x1xi32>
    %300 = arith.cmpi eq, %96, %299 : vector<2x1xi32>
    %301 = vector.shape_cast %300 : vector<2x1xi1> to vector<2x1xi1>
    %302 = vector.broadcast %301 : vector<2x1xi1> to vector<2x32xi1>
    %303 = arith.select %302, %298, %259 : vector<2x32xi1>, vector<2x32xf32>
    %304 = arith.negf %279 : vector<2x128xf32>
    %305 = math.exp %304 : vector<2x128xf32>
    %cst_176 = arith.constant 1.000000e+00 : f32
    %306 = vector.broadcast %cst_176 : f32 to vector<2x128xf32>
    %307 = arith.addf %306, %305 : vector<2x128xf32>
    %308 = arith.divf %306, %307 : vector<2x128xf32>
    %309 = math.tanh %279 : vector<2x128xf32>
    %310 = vector.extract_strided_slice %308 {offsets = [0, 0], sizes = [2, 32], strides = [1, 1]} : vector<2x128xf32> to vector<2x32xf32>
    %311 = vector.extract_strided_slice %308 {offsets = [0, 32], sizes = [2, 32], strides = [1, 1]} : vector<2x128xf32> to vector<2x32xf32>
    %312 = vector.extract_strided_slice %309 {offsets = [0, 64], sizes = [2, 32], strides = [1, 1]} : vector<2x128xf32> to vector<2x32xf32>
    %313 = vector.extract_strided_slice %308 {offsets = [0, 96], sizes = [2, 32], strides = [1, 1]} : vector<2x128xf32> to vector<2x32xf32>
    %314 = arith.mulf %311, %272 : vector<2x32xf32>
    %315 = arith.mulf %310, %312 : vector<2x32xf32>
    %316 = arith.addf %314, %315 : vector<2x32xf32>
    %317 = math.tanh %316 : vector<2x32xf32>
    %318 = arith.mulf %313, %317 : vector<2x32xf32>
    %319 = arith.truncf %318 : vector<2x32xf32> to vector<2x32xbf16>
    %320 = arith.truncf %298 : vector<2x32xf32> to vector<2x32xbf16>
    %321 = vector.extract_strided_slice %166 {offsets = [8, 0], sizes = [2, 128], strides = [1, 1]} : vector<16x128xf32> to vector<2x128xf32>
    %cst_177 = arith.constant dense<0.000000e+00> : vector<2x128xf32>
    %322 = tpu.matmul %319, %80, %cst_177 {dimension_numbers = #tpu.dot_dimension_numbers<[1], [0], [0], [1], [0, 0, 1, 1], [], []>} : vector<2x32xbf16>, vector<32x128xbf16>, vector<2x128xf32> -> vector<2x128xf32>
    %323 = arith.addf %321, %322 : vector<2x128xf32>
    %cst_178 = arith.constant dense<0.000000e+00> : vector<2x128xf32>
    %324 = tpu.matmul %319, %81, %cst_178 {dimension_numbers = #tpu.dot_dimension_numbers<[1], [0], [0], [1], [0, 0, 1, 1], [], []>} : vector<2x32xbf16>, vector<32x128xbf16>, vector<2x128xf32> -> vector<2x128xf32>
    %cst_179 = arith.constant dense<0.000000e+00> : vector<2x128xf32>
    %325 = tpu.matmul %320, %82, %cst_179 {dimension_numbers = #tpu.dot_dimension_numbers<[1], [0], [0], [1], [0, 0, 1, 1], [], []>} : vector<2x32xbf16>, vector<32x128xbf16>, vector<2x128xf32> -> vector<2x128xf32>
    %326 = arith.addf %324, %325 : vector<2x128xf32>
    %327 = arith.addf %326, %85 : vector<2x128xf32>
    %328 = arith.negf %327 : vector<2x128xf32>
    %329 = math.exp %328 : vector<2x128xf32>
    %cst_180 = arith.constant 1.000000e+00 : f32
    %330 = vector.broadcast %cst_180 : f32 to vector<2x128xf32>
    %331 = arith.addf %330, %329 : vector<2x128xf32>
    %332 = arith.divf %330, %331 : vector<2x128xf32>
    %333 = math.tanh %327 : vector<2x128xf32>
    %334 = vector.extract_strided_slice %332 {offsets = [0, 0], sizes = [2, 32], strides = [1, 1]} : vector<2x128xf32> to vector<2x32xf32>
    %335 = vector.extract_strided_slice %332 {offsets = [0, 32], sizes = [2, 32], strides = [1, 1]} : vector<2x128xf32> to vector<2x32xf32>
    %336 = vector.extract_strided_slice %333 {offsets = [0, 64], sizes = [2, 32], strides = [1, 1]} : vector<2x128xf32> to vector<2x32xf32>
    %337 = vector.extract_strided_slice %332 {offsets = [0, 96], sizes = [2, 32], strides = [1, 1]} : vector<2x128xf32> to vector<2x32xf32>
    %338 = arith.mulf %335, %296 : vector<2x32xf32>
    %339 = arith.mulf %334, %336 : vector<2x32xf32>
    %340 = arith.addf %338, %339 : vector<2x32xf32>
    %341 = math.tanh %340 : vector<2x32xf32>
    %342 = arith.mulf %337, %341 : vector<2x32xf32>
    %c3_i32_181 = arith.constant 3 : i32
    %343 = vector.broadcast %c3_i32_181 : i32 to vector<2x1xi32>
    %344 = arith.cmpi eq, %96, %343 : vector<2x1xi32>
    %345 = vector.shape_cast %344 : vector<2x1xi1> to vector<2x1xi1>
    %346 = vector.broadcast %345 : vector<2x1xi1> to vector<2x32xi1>
    %347 = arith.select %346, %342, %303 : vector<2x32xi1>, vector<2x32xf32>
    %348 = arith.negf %323 : vector<2x128xf32>
    %349 = math.exp %348 : vector<2x128xf32>
    %cst_182 = arith.constant 1.000000e+00 : f32
    %350 = vector.broadcast %cst_182 : f32 to vector<2x128xf32>
    %351 = arith.addf %350, %349 : vector<2x128xf32>
    %352 = arith.divf %350, %351 : vector<2x128xf32>
    %353 = math.tanh %323 : vector<2x128xf32>
    %354 = vector.extract_strided_slice %352 {offsets = [0, 0], sizes = [2, 32], strides = [1, 1]} : vector<2x128xf32> to vector<2x32xf32>
    %355 = vector.extract_strided_slice %352 {offsets = [0, 32], sizes = [2, 32], strides = [1, 1]} : vector<2x128xf32> to vector<2x32xf32>
    %356 = vector.extract_strided_slice %353 {offsets = [0, 64], sizes = [2, 32], strides = [1, 1]} : vector<2x128xf32> to vector<2x32xf32>
    %357 = vector.extract_strided_slice %352 {offsets = [0, 96], sizes = [2, 32], strides = [1, 1]} : vector<2x128xf32> to vector<2x32xf32>
    %358 = arith.mulf %355, %316 : vector<2x32xf32>
    %359 = arith.mulf %354, %356 : vector<2x32xf32>
    %360 = arith.addf %358, %359 : vector<2x32xf32>
    %361 = math.tanh %360 : vector<2x32xf32>
    %362 = arith.mulf %357, %361 : vector<2x32xf32>
    %363 = arith.truncf %362 : vector<2x32xf32> to vector<2x32xbf16>
    %364 = arith.truncf %342 : vector<2x32xf32> to vector<2x32xbf16>
    %365 = vector.extract_strided_slice %166 {offsets = [10, 0], sizes = [2, 128], strides = [1, 1]} : vector<16x128xf32> to vector<2x128xf32>
    %cst_183 = arith.constant dense<0.000000e+00> : vector<2x128xf32>
    %366 = tpu.matmul %363, %80, %cst_183 {dimension_numbers = #tpu.dot_dimension_numbers<[1], [0], [0], [1], [0, 0, 1, 1], [], []>} : vector<2x32xbf16>, vector<32x128xbf16>, vector<2x128xf32> -> vector<2x128xf32>
    %367 = arith.addf %365, %366 : vector<2x128xf32>
    %cst_184 = arith.constant dense<0.000000e+00> : vector<2x128xf32>
    %368 = tpu.matmul %363, %81, %cst_184 {dimension_numbers = #tpu.dot_dimension_numbers<[1], [0], [0], [1], [0, 0, 1, 1], [], []>} : vector<2x32xbf16>, vector<32x128xbf16>, vector<2x128xf32> -> vector<2x128xf32>
    %cst_185 = arith.constant dense<0.000000e+00> : vector<2x128xf32>
    %369 = tpu.matmul %364, %82, %cst_185 {dimension_numbers = #tpu.dot_dimension_numbers<[1], [0], [0], [1], [0, 0, 1, 1], [], []>} : vector<2x32xbf16>, vector<32x128xbf16>, vector<2x128xf32> -> vector<2x128xf32>
    %370 = arith.addf %368, %369 : vector<2x128xf32>
    %371 = arith.addf %370, %85 : vector<2x128xf32>
    %372 = arith.negf %371 : vector<2x128xf32>
    %373 = math.exp %372 : vector<2x128xf32>
    %cst_186 = arith.constant 1.000000e+00 : f32
    %374 = vector.broadcast %cst_186 : f32 to vector<2x128xf32>
    %375 = arith.addf %374, %373 : vector<2x128xf32>
    %376 = arith.divf %374, %375 : vector<2x128xf32>
    %377 = math.tanh %371 : vector<2x128xf32>
    %378 = vector.extract_strided_slice %376 {offsets = [0, 0], sizes = [2, 32], strides = [1, 1]} : vector<2x128xf32> to vector<2x32xf32>
    %379 = vector.extract_strided_slice %376 {offsets = [0, 32], sizes = [2, 32], strides = [1, 1]} : vector<2x128xf32> to vector<2x32xf32>
    %380 = vector.extract_strided_slice %377 {offsets = [0, 64], sizes = [2, 32], strides = [1, 1]} : vector<2x128xf32> to vector<2x32xf32>
    %381 = vector.extract_strided_slice %376 {offsets = [0, 96], sizes = [2, 32], strides = [1, 1]} : vector<2x128xf32> to vector<2x32xf32>
    %382 = arith.mulf %379, %340 : vector<2x32xf32>
    %383 = arith.mulf %378, %380 : vector<2x32xf32>
    %384 = arith.addf %382, %383 : vector<2x32xf32>
    %385 = math.tanh %384 : vector<2x32xf32>
    %386 = arith.mulf %381, %385 : vector<2x32xf32>
    %c4_i32_187 = arith.constant 4 : i32
    %387 = vector.broadcast %c4_i32_187 : i32 to vector<2x1xi32>
    %388 = arith.cmpi eq, %96, %387 : vector<2x1xi32>
    %389 = vector.shape_cast %388 : vector<2x1xi1> to vector<2x1xi1>
    %390 = vector.broadcast %389 : vector<2x1xi1> to vector<2x32xi1>
    %391 = arith.select %390, %386, %347 : vector<2x32xi1>, vector<2x32xf32>
    %392 = arith.negf %367 : vector<2x128xf32>
    %393 = math.exp %392 : vector<2x128xf32>
    %cst_188 = arith.constant 1.000000e+00 : f32
    %394 = vector.broadcast %cst_188 : f32 to vector<2x128xf32>
    %395 = arith.addf %394, %393 : vector<2x128xf32>
    %396 = arith.divf %394, %395 : vector<2x128xf32>
    %397 = math.tanh %367 : vector<2x128xf32>
    %398 = vector.extract_strided_slice %396 {offsets = [0, 0], sizes = [2, 32], strides = [1, 1]} : vector<2x128xf32> to vector<2x32xf32>
    %399 = vector.extract_strided_slice %396 {offsets = [0, 32], sizes = [2, 32], strides = [1, 1]} : vector<2x128xf32> to vector<2x32xf32>
    %400 = vector.extract_strided_slice %397 {offsets = [0, 64], sizes = [2, 32], strides = [1, 1]} : vector<2x128xf32> to vector<2x32xf32>
    %401 = vector.extract_strided_slice %396 {offsets = [0, 96], sizes = [2, 32], strides = [1, 1]} : vector<2x128xf32> to vector<2x32xf32>
    %402 = arith.mulf %399, %360 : vector<2x32xf32>
    %403 = arith.mulf %398, %400 : vector<2x32xf32>
    %404 = arith.addf %402, %403 : vector<2x32xf32>
    %405 = math.tanh %404 : vector<2x32xf32>
    %406 = arith.mulf %401, %405 : vector<2x32xf32>
    %407 = arith.truncf %406 : vector<2x32xf32> to vector<2x32xbf16>
    %408 = arith.truncf %386 : vector<2x32xf32> to vector<2x32xbf16>
    %409 = vector.extract_strided_slice %166 {offsets = [12, 0], sizes = [2, 128], strides = [1, 1]} : vector<16x128xf32> to vector<2x128xf32>
    %cst_189 = arith.constant dense<0.000000e+00> : vector<2x128xf32>
    %410 = tpu.matmul %407, %80, %cst_189 {dimension_numbers = #tpu.dot_dimension_numbers<[1], [0], [0], [1], [0, 0, 1, 1], [], []>} : vector<2x32xbf16>, vector<32x128xbf16>, vector<2x128xf32> -> vector<2x128xf32>
    %411 = arith.addf %409, %410 : vector<2x128xf32>
    %cst_190 = arith.constant dense<0.000000e+00> : vector<2x128xf32>
    %412 = tpu.matmul %407, %81, %cst_190 {dimension_numbers = #tpu.dot_dimension_numbers<[1], [0], [0], [1], [0, 0, 1, 1], [], []>} : vector<2x32xbf16>, vector<32x128xbf16>, vector<2x128xf32> -> vector<2x128xf32>
    %cst_191 = arith.constant dense<0.000000e+00> : vector<2x128xf32>
    %413 = tpu.matmul %408, %82, %cst_191 {dimension_numbers = #tpu.dot_dimension_numbers<[1], [0], [0], [1], [0, 0, 1, 1], [], []>} : vector<2x32xbf16>, vector<32x128xbf16>, vector<2x128xf32> -> vector<2x128xf32>
    %414 = arith.addf %412, %413 : vector<2x128xf32>
    %415 = arith.addf %414, %85 : vector<2x128xf32>
    %416 = arith.negf %415 : vector<2x128xf32>
    %417 = math.exp %416 : vector<2x128xf32>
    %cst_192 = arith.constant 1.000000e+00 : f32
    %418 = vector.broadcast %cst_192 : f32 to vector<2x128xf32>
    %419 = arith.addf %418, %417 : vector<2x128xf32>
    %420 = arith.divf %418, %419 : vector<2x128xf32>
    %421 = math.tanh %415 : vector<2x128xf32>
    %422 = vector.extract_strided_slice %420 {offsets = [0, 0], sizes = [2, 32], strides = [1, 1]} : vector<2x128xf32> to vector<2x32xf32>
    %423 = vector.extract_strided_slice %420 {offsets = [0, 32], sizes = [2, 32], strides = [1, 1]} : vector<2x128xf32> to vector<2x32xf32>
    %424 = vector.extract_strided_slice %421 {offsets = [0, 64], sizes = [2, 32], strides = [1, 1]} : vector<2x128xf32> to vector<2x32xf32>
    %425 = vector.extract_strided_slice %420 {offsets = [0, 96], sizes = [2, 32], strides = [1, 1]} : vector<2x128xf32> to vector<2x32xf32>
    %426 = arith.mulf %423, %384 : vector<2x32xf32>
    %427 = arith.mulf %422, %424 : vector<2x32xf32>
    %428 = arith.addf %426, %427 : vector<2x32xf32>
    %429 = math.tanh %428 : vector<2x32xf32>
    %430 = arith.mulf %425, %429 : vector<2x32xf32>
    %c5_i32_193 = arith.constant 5 : i32
    %431 = vector.broadcast %c5_i32_193 : i32 to vector<2x1xi32>
    %432 = arith.cmpi eq, %96, %431 : vector<2x1xi32>
    %433 = vector.shape_cast %432 : vector<2x1xi1> to vector<2x1xi1>
    %434 = vector.broadcast %433 : vector<2x1xi1> to vector<2x32xi1>
    %435 = arith.select %434, %430, %391 : vector<2x32xi1>, vector<2x32xf32>
    %436 = arith.negf %411 : vector<2x128xf32>
    %437 = math.exp %436 : vector<2x128xf32>
    %cst_194 = arith.constant 1.000000e+00 : f32
    %438 = vector.broadcast %cst_194 : f32 to vector<2x128xf32>
    %439 = arith.addf %438, %437 : vector<2x128xf32>
    %440 = arith.divf %438, %439 : vector<2x128xf32>
    %441 = math.tanh %411 : vector<2x128xf32>
    %442 = vector.extract_strided_slice %440 {offsets = [0, 0], sizes = [2, 32], strides = [1, 1]} : vector<2x128xf32> to vector<2x32xf32>
    %443 = vector.extract_strided_slice %440 {offsets = [0, 32], sizes = [2, 32], strides = [1, 1]} : vector<2x128xf32> to vector<2x32xf32>
    %444 = vector.extract_strided_slice %441 {offsets = [0, 64], sizes = [2, 32], strides = [1, 1]} : vector<2x128xf32> to vector<2x32xf32>
    %445 = vector.extract_strided_slice %440 {offsets = [0, 96], sizes = [2, 32], strides = [1, 1]} : vector<2x128xf32> to vector<2x32xf32>
    %446 = arith.mulf %443, %404 : vector<2x32xf32>
    %447 = arith.mulf %442, %444 : vector<2x32xf32>
    %448 = arith.addf %446, %447 : vector<2x32xf32>
    %449 = math.tanh %448 : vector<2x32xf32>
    %450 = arith.mulf %445, %449 : vector<2x32xf32>
    %451 = arith.truncf %450 : vector<2x32xf32> to vector<2x32xbf16>
    %452 = arith.truncf %430 : vector<2x32xf32> to vector<2x32xbf16>
    %453 = vector.extract_strided_slice %166 {offsets = [14, 0], sizes = [2, 128], strides = [1, 1]} : vector<16x128xf32> to vector<2x128xf32>
    %cst_195 = arith.constant dense<0.000000e+00> : vector<2x128xf32>
    %454 = tpu.matmul %451, %80, %cst_195 {dimension_numbers = #tpu.dot_dimension_numbers<[1], [0], [0], [1], [0, 0, 1, 1], [], []>} : vector<2x32xbf16>, vector<32x128xbf16>, vector<2x128xf32> -> vector<2x128xf32>
    %455 = arith.addf %453, %454 : vector<2x128xf32>
    %cst_196 = arith.constant dense<0.000000e+00> : vector<2x128xf32>
    %456 = tpu.matmul %451, %81, %cst_196 {dimension_numbers = #tpu.dot_dimension_numbers<[1], [0], [0], [1], [0, 0, 1, 1], [], []>} : vector<2x32xbf16>, vector<32x128xbf16>, vector<2x128xf32> -> vector<2x128xf32>
    %cst_197 = arith.constant dense<0.000000e+00> : vector<2x128xf32>
    %457 = tpu.matmul %452, %82, %cst_197 {dimension_numbers = #tpu.dot_dimension_numbers<[1], [0], [0], [1], [0, 0, 1, 1], [], []>} : vector<2x32xbf16>, vector<32x128xbf16>, vector<2x128xf32> -> vector<2x128xf32>
    %458 = arith.addf %456, %457 : vector<2x128xf32>
    %459 = arith.addf %458, %85 : vector<2x128xf32>
    %460 = arith.negf %459 : vector<2x128xf32>
    %461 = math.exp %460 : vector<2x128xf32>
    %cst_198 = arith.constant 1.000000e+00 : f32
    %462 = vector.broadcast %cst_198 : f32 to vector<2x128xf32>
    %463 = arith.addf %462, %461 : vector<2x128xf32>
    %464 = arith.divf %462, %463 : vector<2x128xf32>
    %465 = math.tanh %459 : vector<2x128xf32>
    %466 = vector.extract_strided_slice %464 {offsets = [0, 0], sizes = [2, 32], strides = [1, 1]} : vector<2x128xf32> to vector<2x32xf32>
    %467 = vector.extract_strided_slice %464 {offsets = [0, 32], sizes = [2, 32], strides = [1, 1]} : vector<2x128xf32> to vector<2x32xf32>
    %468 = vector.extract_strided_slice %465 {offsets = [0, 64], sizes = [2, 32], strides = [1, 1]} : vector<2x128xf32> to vector<2x32xf32>
    %469 = vector.extract_strided_slice %464 {offsets = [0, 96], sizes = [2, 32], strides = [1, 1]} : vector<2x128xf32> to vector<2x32xf32>
    %470 = arith.mulf %467, %428 : vector<2x32xf32>
    %471 = arith.mulf %466, %468 : vector<2x32xf32>
    %472 = arith.addf %470, %471 : vector<2x32xf32>
    %473 = math.tanh %472 : vector<2x32xf32>
    %474 = arith.mulf %469, %473 : vector<2x32xf32>
    %c6_i32_199 = arith.constant 6 : i32
    %475 = vector.broadcast %c6_i32_199 : i32 to vector<2x1xi32>
    %476 = arith.cmpi eq, %96, %475 : vector<2x1xi32>
    %477 = vector.shape_cast %476 : vector<2x1xi1> to vector<2x1xi1>
    %478 = vector.broadcast %477 : vector<2x1xi1> to vector<2x32xi1>
    %479 = arith.select %478, %474, %435 : vector<2x32xi1>, vector<2x32xf32>
    %480 = arith.negf %455 : vector<2x128xf32>
    %481 = math.exp %480 : vector<2x128xf32>
    %cst_200 = arith.constant 1.000000e+00 : f32
    %482 = vector.broadcast %cst_200 : f32 to vector<2x128xf32>
    %483 = arith.addf %482, %481 : vector<2x128xf32>
    %484 = arith.divf %482, %483 : vector<2x128xf32>
    %485 = math.tanh %455 : vector<2x128xf32>
    %486 = vector.extract_strided_slice %484 {offsets = [0, 0], sizes = [2, 32], strides = [1, 1]} : vector<2x128xf32> to vector<2x32xf32>
    %487 = vector.extract_strided_slice %484 {offsets = [0, 32], sizes = [2, 32], strides = [1, 1]} : vector<2x128xf32> to vector<2x32xf32>
    %488 = vector.extract_strided_slice %485 {offsets = [0, 64], sizes = [2, 32], strides = [1, 1]} : vector<2x128xf32> to vector<2x32xf32>
    %489 = vector.extract_strided_slice %484 {offsets = [0, 96], sizes = [2, 32], strides = [1, 1]} : vector<2x128xf32> to vector<2x32xf32>
    %490 = arith.mulf %487, %448 : vector<2x32xf32>
    %491 = arith.mulf %486, %488 : vector<2x32xf32>
    %492 = arith.addf %490, %491 : vector<2x32xf32>
    %493 = math.tanh %492 : vector<2x32xf32>
    %494 = arith.mulf %489, %493 : vector<2x32xf32>
    %495 = arith.truncf %494 : vector<2x32xf32> to vector<2x32xbf16>
    %496 = arith.truncf %474 : vector<2x32xf32> to vector<2x32xbf16>
    %cst_201 = arith.constant dense<0.000000e+00> : vector<2x128xf32>
    %497 = tpu.matmul %495, %81, %cst_201 {dimension_numbers = #tpu.dot_dimension_numbers<[1], [0], [0], [1], [0, 0, 1, 1], [], []>} : vector<2x32xbf16>, vector<32x128xbf16>, vector<2x128xf32> -> vector<2x128xf32>
    %cst_202 = arith.constant dense<0.000000e+00> : vector<2x128xf32>
    %498 = tpu.matmul %496, %82, %cst_202 {dimension_numbers = #tpu.dot_dimension_numbers<[1], [0], [0], [1], [0, 0, 1, 1], [], []>} : vector<2x32xbf16>, vector<32x128xbf16>, vector<2x128xf32> -> vector<2x128xf32>
    %499 = arith.addf %497, %498 : vector<2x128xf32>
    %500 = arith.addf %499, %85 : vector<2x128xf32>
    %501 = arith.negf %500 : vector<2x128xf32>
    %502 = math.exp %501 : vector<2x128xf32>
    %cst_203 = arith.constant 1.000000e+00 : f32
    %503 = vector.broadcast %cst_203 : f32 to vector<2x128xf32>
    %504 = arith.addf %503, %502 : vector<2x128xf32>
    %505 = arith.divf %503, %504 : vector<2x128xf32>
    %506 = math.tanh %500 : vector<2x128xf32>
    %507 = vector.extract_strided_slice %505 {offsets = [0, 0], sizes = [2, 32], strides = [1, 1]} : vector<2x128xf32> to vector<2x32xf32>
    %508 = vector.extract_strided_slice %505 {offsets = [0, 32], sizes = [2, 32], strides = [1, 1]} : vector<2x128xf32> to vector<2x32xf32>
    %509 = vector.extract_strided_slice %506 {offsets = [0, 64], sizes = [2, 32], strides = [1, 1]} : vector<2x128xf32> to vector<2x32xf32>
    %510 = vector.extract_strided_slice %505 {offsets = [0, 96], sizes = [2, 32], strides = [1, 1]} : vector<2x128xf32> to vector<2x32xf32>
    %511 = arith.mulf %508, %472 : vector<2x32xf32>
    %512 = arith.mulf %507, %509 : vector<2x32xf32>
    %513 = arith.addf %511, %512 : vector<2x32xf32>
    %514 = math.tanh %513 : vector<2x32xf32>
    %515 = arith.mulf %510, %514 : vector<2x32xf32>
    %c7_i32_204 = arith.constant 7 : i32
    %516 = vector.broadcast %c7_i32_204 : i32 to vector<2x1xi32>
    %517 = arith.cmpi eq, %96, %516 : vector<2x1xi32>
    %518 = vector.shape_cast %517 : vector<2x1xi1> to vector<2x1xi1>
    %519 = vector.broadcast %518 : vector<2x1xi1> to vector<2x32xi1>
    %520 = arith.select %519, %515, %479 : vector<2x32xi1>, vector<2x32xf32>
    %c0_205 = arith.constant 0 : index
    %c0_206 = arith.constant 0 : index
    %521 = vector.load %arg9[%c0_205, %c0_206] : memref<32x4xf32, #tpu.memory_space<vmem>>, vector<32x4xf32>
    %cst_207 = arith.constant dense<0.000000e+00> : vector<2x4xf32>
    %522 = tpu.matmul %520, %521, %cst_207 {dimension_numbers = #tpu.dot_dimension_numbers<[1], [0], [0], [1], [0, 0, 1, 1], [], []>} : vector<2x32xf32>, vector<32x4xf32>, vector<2x4xf32> -> vector<2x4xf32>
    %c0_208 = arith.constant 0 : index
    %c0_209 = arith.constant 0 : index
    %523 = vector.load %arg10[%c0_208, %c0_209] : memref<1x4xf32, #tpu.memory_space<vmem>>, vector<1x4xf32>
    %524 = vector.broadcast %523 : vector<1x4xf32> to vector<2x4xf32>
    %525 = arith.addf %522, %524 : vector<2x4xf32>
    %c0_210 = arith.constant 0 : index
    %c0_211 = arith.constant 0 : index
    %526 = vector.load %arg11[%c0_210, %c0_211] : memref<2x4xf32, #tpu.memory_space<vmem>>, vector<2x4xf32>
    tpu.vector_store %arg11[%c0_210, %c0_211], %525 {strides = array<i32>} : memref<2x4xf32, #tpu.memory_space<vmem>>, vector<2x4xf32>,
    return
  }
}

</mosaic_0001>

<bundles_post_ra>
// kernel: tpu_custom_call.1
= control target key start
LH: loop header
LB: loop body
LE: loop exit
PB: predicated region body
PF: predicated region fallthrough
CT: control target
= control target key end

     0   :  { %16 = vsyncpa [#allocation6], 0  ;;  %s4139_s0 = inlined_call_operand.vmem [shape: s32[2,8], index: 0, kind: input, shape index: {}]   ;;  %s4140_s1 = inlined_call_operand.vmem [shape: s32[2,8], index: 1, kind: input, shape index: {}]   ;;  %s4141_s2 = inlined_call_operand.vmem [shape: f32[21128,32], index: 2, kind: input, shape index: {}]   ;;  %s4142_s3 = inlined_call_operand.vmem [shape: f32[32,128], index: 3, kind: input, shape index: {}]   ;;  %s4143_s4 = inlined_call_operand.vmem [shape: f32[1,128], index: 4, kind: input, shape index: {}]   ;;  %s4144_s5 = inlined_call_operand.vmem [shape: bf16[32,128], index: 5, kind: input, shape index: {}]   ;;  %s4145_s6 = inlined_call_operand.vmem [shape: bf16[32,128], index: 6, kind: input, shape index: {}]   ;;  %s4146_s7 = inlined_call_operand.vmem [shape: bf16[32,128], index: 7, kind: input, shape index: {}]   ;;  %s4147_s8 = inlined_call_operand.vmem [shape: f32[1,128], index: 8, kind: input, shape index: {}]   ;;  %s4148_s9 = inlined_call_operand.vmem [shape: f32[32,4], index: 9, kind: input, shape index: {}]   ;;  %s4149_s10 = inlined_call_operand.vmem [shape: f32[1,4], index: 10, kind: input, shape index: {}]   ;;  %s4150_s11 = inlined_call_operand.hbm [shape: f32[2,4], index: 11, kind: output, shape index: {}]  }
   0x1   :  { %17 = vsyncpa [#allocation5], 0  ;;  %s24_s19 = sshll.u32 %s4139_s0, 4  ;;  %s25_s19 = int_to_ptr.vmem [resolvable:$true] %s24_s19 }
   0x2   :  { %s3491_s20 = scalar_lea.vmem %s25_s19, 32  ;;  %p3496_p1 = scmp.lt.s32.totalorder %s25_s19, %s25_s19 }
   0x3   :  { %p3492_p0 = scmp.ne.s32.totalorder %s25_s19, %s3491_s20  ;;  %p3497_p2 = scmp.lt.s32.totalorder %s3491_s20, %s3491_s20 }
   0x5   :  { %p3498_p3 = por %p3497_p2, %p3496_p1 }
   0x7   :  { %p3499_p4 = pnand %p3498_p3, %p3492_p0 }
   0x9   :  { %3502 = shalt.err (!%p3499_p4)
}
   0xa   :  { %s3561_s21 = smov [#allocation4]  }
   0xb   :  { %27 = dma.vmem_to_smem %s25_s19, 32, %s3561_s21, [#allocation6]  }
   0xc   :  { %3525 = dma.done.wait [#allocation6], 32  }
   0xd   :  { %3526 = vsyncadd [#allocation6], 4294967264 }
   0xe   :  { %49 = sfence }
   0xf   :  { %s51_s22 = sld [smem:[#allocation4]] }
  0x15   :  { %s52_s25 = scalar_lea.vmem %s4141_s2, %s51_s22 }
  0x16   :  { %v70_v0 = vld [vmem:[%s52_s25] sm:$0x1] }
  0x17   :  { %71 = vst [vmem:[#allocation2] sm:$0x1] %v70_v0 }
  0x18   :  { %96 = vsyncadd [#allocation3], 16  ;;  %s2960_s0 = sld [smem:[#allocation4 + $0x80]] }
  0x1e   :  { %s98_s28 = scalar_lea.vmem %s4141_s2, %s2960_s0 }
  0x1f   :  { %v118_v1 = vld [vmem:[%s98_s28] sm:$0x1] }
  0x20   :  { %119 = vst [vmem:[#allocation2 + $0x1] sm:$0x1] %v118_v1 }
  0x21   :  { %144 = vsyncadd [#allocation3 + $0x1], 16  ;;  %s2961_s29 = sld [smem:[#allocation4 + $0x1]] }
  0x27   :  { %s146_s13 = scalar_lea.vmem %s4141_s2, %s2961_s29 }
  0x28   :  { %v166_v2 = vld [vmem:[%s146_s13] sm:$0x1] }
  0x29   :  { %167 = vst [vmem:[#allocation2 + $0x2] sm:$0x1] %v166_v2 }
  0x2a   :  { %192 = vsyncadd [#allocation3 + $0x2], 16  ;;  %s2962_s14 = sld [smem:[#allocation4 + $0x81]] }
  0x30   :  { %s194_s17 = scalar_lea.vmem %s4141_s2, %s2962_s14 }
  0x31   :  { %v214_v3 = vld [vmem:[%s194_s17] sm:$0x1] }
  0x32   :  { %215 = vst [vmem:[#allocation2 + $0x3] sm:$0x1] %v214_v3 }
  0x33   :  { %240 = vsyncadd [#allocation3 + $0x3], 16  ;;  %s2963_s18 = sld [smem:[#allocation4 + $0x2]] }
  0x39   :  { %s242_s21 = scalar_lea.vmem %s4141_s2, %s2963_s18 }
  0x3a   :  { %v262_v4 = vld [vmem:[%s242_s21] sm:$0x1] }
  0x3b   :  { %263 = vst [vmem:[#allocation2 + $0x4] sm:$0x1] %v262_v4 }
  0x3c   :  { %288 = vsyncadd [#allocation3 + $0x4], 16  ;;  %s2964_s22 = sld [smem:[#allocation4 + $0x82]] }
  0x42   :  { %s290_s25 = scalar_lea.vmem %s4141_s2, %s2964_s22 }
  0x43   :  { %v310_v5 = vld [vmem:[%s290_s25] sm:$0x1] }
  0x44   :  { %311 = vst [vmem:[#allocation2 + $0x5] sm:$0x1] %v310_v5 }
  0x45   :  { %336 = vsyncadd [#allocation3 + $0x5], 16  ;;  %s2965_s0 = sld [smem:[#allocation4 + $0x3]] }
  0x4b   :  { %s338_s28 = scalar_lea.vmem %s4141_s2, %s2965_s0 }
  0x4c   :  { %v358_v6 = vld [vmem:[%s338_s28] sm:$0x1] }
  0x4d   :  { %359 = vst [vmem:[#allocation2 + $0x6] sm:$0x1] %v358_v6 }
  0x4e   :  { %384 = vsyncadd [#allocation3 + $0x6], 16  ;;  %s2966_s29 = sld [smem:[#allocation4 + $0x83]] }
  0x54   :  { %s386_s13 = scalar_lea.vmem %s4141_s2, %s2966_s29 }
  0x55   :  { %v406_v7 = vld [vmem:[%s386_s13] sm:$0x1] }
  0x56   :  { %407 = vst [vmem:[#allocation2 + $0x7] sm:$0x1] %v406_v7 }
  0x57   :  { %432 = vsyncadd [#allocation3 + $0x7], 16  ;;  %s2967_s14 = sld [smem:[#allocation4 + $0x4]] }
  0x5d   :  { %s434_s17 = scalar_lea.vmem %s4141_s2, %s2967_s14 }
  0x5e   :  { %v454_v8 = vld [vmem:[%s434_s17] sm:$0x1] }
  0x5f   :  { %455 = vst [vmem:[#allocation2 + $0x8] sm:$0x1] %v454_v8 }
  0x60   :  { %480 = vsyncadd [#allocation3 + $0x8], 16  ;;  %s2968_s18 = sld [smem:[#allocation4 + $0x84]] }
  0x66   :  { %s482_s21 = scalar_lea.vmem %s4141_s2, %s2968_s18 }
  0x67   :  { %v502_v9 = vld [vmem:[%s482_s21] sm:$0x1] }
  0x68   :  { %503 = vst [vmem:[#allocation2 + $0x9] sm:$0x1] %v502_v9 }
  0x69   :  { %528 = vsyncadd [#allocation3 + $0x9], 16  ;;  %s2969_s22 = sld [smem:[#allocation4 + $0x5]] }
  0x6f   :  { %s530_s25 = scalar_lea.vmem %s4141_s2, %s2969_s22 }
  0x70   :  { %v550_v10 = vld [vmem:[%s530_s25] sm:$0x1] }
  0x71   :  { %551 = vst [vmem:[#allocation2 + $0xa] sm:$0x1] %v550_v10 }
  0x72   :  { %576 = vsyncadd [#allocation3 + $0xa], 16  ;;  %s2970_s0 = sld [smem:[#allocation4 + $0x85]] }
  0x78   :  { %s578_s28 = scalar_lea.vmem %s4141_s2, %s2970_s0 }
  0x79   :  { %v598_v11 = vld [vmem:[%s578_s28] sm:$0x1] }
  0x7a   :  { %599 = vst [vmem:[#allocation2 + $0xb] sm:$0x1] %v598_v11 }
  0x7b   :  { %624 = vsyncadd [#allocation3 + $0xb], 16  ;;  %s2971_s29 = sld [smem:[#allocation4 + $0x6]] }
  0x81   :  { %s626_s13 = scalar_lea.vmem %s4141_s2, %s2971_s29 }
  0x82   :  { %v646_v12 = vld [vmem:[%s626_s13] sm:$0x1] }
  0x83   :  { %647 = vst [vmem:[#allocation2 + $0xc] sm:$0x1] %v646_v12 }
  0x84   :  { %672 = vsyncadd [#allocation3 + $0xc], 16  ;;  %s2972_s14 = sld [smem:[#allocation4 + $0x86]] }
  0x8a   :  { %s674_s17 = scalar_lea.vmem %s4141_s2, %s2972_s14 }
  0x8b   :  { %v694_v13 = vld [vmem:[%s674_s17] sm:$0x1] }
  0x8c   :  { %695 = vst [vmem:[#allocation2 + $0xd] sm:$0x1] %v694_v13 }
  0x8d   :  { %720 = vsyncadd [#allocation3 + $0xd], 16  ;;  %s2973_s18 = sld [smem:[#allocation4 + $0x7]] }
  0x93   :  { %s722_s21 = scalar_lea.vmem %s4141_s2, %s2973_s18 }
  0x94   :  { %v742_v14 = vld [vmem:[%s722_s21] sm:$0x1] }
  0x95   :  { %743 = vst [vmem:[#allocation2 + $0xe] sm:$0x1] %v742_v14 }
  0x96   :  { %768 = vsyncadd [#allocation3 + $0xe], 16  ;;  %s2974_s22 = sld [smem:[#allocation4 + $0x87]] }
  0x9c   :  { %s770_s25 = scalar_lea.vmem %s4141_s2, %s2974_s22 }
  0x9d   :  { %v790_v15 = vld [vmem:[%s770_s25] sm:$0x1] }
  0x9e   :  { %791 = vst [vmem:[#allocation2 + $0xf] sm:$0x1] %v790_v15 }
  0x9f   :  { %816 = vsyncadd [#allocation3 + $0xf], 16  ;;  %v817_v16 = vld [vmem:[%s4144_s5] sm:$0xf]  ;;  %v818_v17 = vld [vmem:[%s4144_s5 + $0x4] sm:$0xf] }
  0xa0   :  { %v819_v18 = vld [vmem:[%s4144_s5 + $0x8] sm:$0xf]  ;;  %v820_v19 = vld [vmem:[%s4144_s5 + $0xc] sm:$0xf]  ;;  %v3695_v20 = vld [vmem:[%s4145_s6] sm:$0xf] }
  0xa1   :  { %v3700_v21 = vld [vmem:[%s4145_s6 + $0x4] sm:$0xf]  ;;  %v3705_v22 = vld [vmem:[%s4145_s6 + $0x8] sm:$0xf]  ;;  %v3710_v23 = vld [vmem:[%s4145_s6 + $0xc] sm:$0xf] }
  0xa2   :  { %v3715_v24 = vld [vmem:[%s4146_s7] sm:$0xf]  ;;  %v3720_v25 = vld [vmem:[%s4146_s7 + $0x4] sm:$0xf]  ;;  %v3725_v26 = vld [vmem:[%s4146_s7 + $0x8] sm:$0xf] }
  0xa3   :  { %v3730_v27 = vld [vmem:[%s4146_s7 + $0xc] sm:$0xf]  ;;  %v3735_v28 = vld [vmem:[%s4147_s8] ss:$0 sm:$0xff]  ;;  %vm838_vm0 = vcmask 58368  }
  0xa4   :  { %v836_v29 = vld [vmem:[%s4140_s1] sm:$0x3] }
  0xa5   :  { %v837_v30 = vcvt.s32.f32 %v836_v29 }
  0xa7   :  { %v839_v31 = vsel %vm838_vm0, %v837_v30, 0.0 }
  0xa8   :  { %840 = vadd.xlane.f32.xlu0 %v839_v31 }
 0x135   :  { %v841_v32 = vpop.xlane.xlu0 %840 }
 0x136   :  { %v2976_v33 = vadd.f32 -1.0, %v841_v32 }
 0x138   :  { %vm843_vm1 = vcmp.lt.f32.partialorder %v2976_v33, 0.0 }
 0x139   :  { %v844_v34 = vsel %vm843_vm1, 7.0, %v2976_v33 }
 0x13a   :  { %v3353_v35 = vtrunc.f32 %v844_v34 }
 0x13c   :  { %v3740_v36 = vcvt.f32.s32 %v3353_v35 }
 0x13d   :  { %3527 = dma.done.wait [#allocation3], 16 }
 0x13e   :  { %3528 = vsyncadd [#allocation3], 4294967280 }
 0x13f   :  { %3529 = dma.done.wait [#allocation3 + $0x1], 16 }
 0x140   :  { %3530 = vsyncadd [#allocation3 + $0x1], 4294967280 }
 0x141   :  { %3531 = dma.done.wait [#allocation3 + $0x2], 16 }
 0x142   :  { %3532 = vsyncadd [#allocation3 + $0x2], 4294967280 }
 0x143   :  { %3533 = dma.done.wait [#allocation3 + $0x3], 16 }
 0x144   :  { %3534 = vsyncadd [#allocation3 + $0x3], 4294967280 }
 0x145   :  { %3535 = dma.done.wait [#allocation3 + $0x4], 16 }
 0x146   :  { %3536 = vsyncadd [#allocation3 + $0x4], 4294967280 }
 0x147   :  { %3537 = dma.done.wait [#allocation3 + $0x5], 16 }
 0x148   :  { %3538 = vsyncadd [#allocation3 + $0x5], 4294967280 }
 0x149   :  { %3539 = dma.done.wait [#allocation3 + $0x6], 16 }
 0x14a   :  { %3540 = vsyncadd [#allocation3 + $0x6], 4294967280 }
 0x14b   :  { %3541 = dma.done.wait [#allocation3 + $0x7], 16 }
 0x14c   :  { %3542 = vsyncadd [#allocation3 + $0x7], 4294967280 }
 0x14d   :  { %3543 = dma.done.wait [#allocation3 + $0x8], 16 }
 0x14e   :  { %3544 = vsyncadd [#allocation3 + $0x8], 4294967280 }
 0x14f   :  { %3545 = dma.done.wait [#allocation3 + $0x9], 16 }
 0x150   :  { %3546 = vsyncadd [#allocation3 + $0x9], 4294967280 }
 0x151   :  { %3547 = dma.done.wait [#allocation3 + $0xa], 16 }
 0x152   :  { %3548 = vsyncadd [#allocation3 + $0xa], 4294967280 }
 0x153   :  { %3549 = dma.done.wait [#allocation3 + $0xb], 16 }
 0x154   :  { %3550 = vsyncadd [#allocation3 + $0xb], 4294967280 }
 0x155   :  { %3551 = dma.done.wait [#allocation3 + $0xc], 16 }
 0x156   :  { %3552 = vsyncadd [#allocation3 + $0xc], 4294967280 }
 0x157   :  { %3553 = dma.done.wait [#allocation3 + $0xd], 16 }
 0x158   :  { %3554 = vsyncadd [#allocation3 + $0xd], 4294967280 }
 0x159   :  { %3555 = dma.done.wait [#allocation3 + $0xe], 16 }
 0x15a   :  { %3556 = vsyncadd [#allocation3 + $0xe], 4294967280 }
 0x15b   :  { %3557 = dma.done.wait [#allocation3 + $0xf], 16 }
 0x15c   :  { %3558 = vsyncadd [#allocation3 + $0xf], 4294967280  ;;  %v3742_v37 = vcombine.low %v817_v16, %v818_v17  ;;  %v3562_v38 = vmov 0.0   ;;  %v3746_v39 = vcombine.low %v819_v18, %v820_v19  ;;  %vm3563_vm2 = vmmov 0   ;;  %v881_v40 = vld [vmem:[%s4142_s3] sm:$0xff]  ;;  %v882_v41 = vld [vmem:[%s4142_s3 + $0x8] sm:$0xff] }
 0x15d   :  { %3136 = vmatprep.subr.bf16.mxu1 %v3562_v38  ;;  %3140 = vmatprep.mubr.msk.bf16.mxu1 %vm3563_vm2, %v3562_v38  ;;  %vm892_vm3 = vcmask 261120   ;;  %v883_v42 = vld [vmem:[%s4142_s3 + $0x10] sm:$0xff]  ;;  %v3339_v43 = vpack.c.bf16 %v882_v41, %v881_v40  ;;  %v884_v44 = vld [vmem:[%s4142_s3 + $0x18] sm:$0xff]  ;;  %v879_v45 = vld [vmem:[#allocation2] sm:$0xff]  ;;  %v3564_v47 = vmov 0   ;;  %s3565_s16 = smov 64   ;;  %v3792_v6 = vcombine.low %v3715_v24, %v3720_v25 }
 0x15e   :  { %3137 = vmatpush3.bf16.msra.mxu1 %v3742_v37  ;;  %v3343_v46 = vpack.c.bf16 %v884_v44, %v883_v42  ;;  %3133 = vmatprep.mubr.msk.f32.mxu0 %vm892_vm3, %v879_v45  ;;  %v880_v48 = vld [vmem:[#allocation2 + $0x8] sm:$0xff]  ;;  %v2977_v53 = vld [vmem:[%s4143_s4] ss:$0 sm:$0xff]  ;;  %s3566_s4 = smov 32   ;;  %v3798_v7 = vcombine.low %v3725_v26, %v3730_v27  ;;  %v3811_v11 = vcombine.low %v3695_v20, %v3700_v21  ;;  %vm1234_vm4 = vcmp.eq.s32.totalorder %v3740_v36, 0 }
 0x15f   :  { %3138 = vmatprep.subr.bf16.mxu1 %v3562_v38  ;;  %3340 = vmatprep.subr.bf16.mxu0 %v3339_v43  ;;  %v3817_v13 = vcombine.low %v3705_v22, %v3710_v23  ;;  %vm1429_vm5 = vcmp.eq.s32.totalorder %v3740_v36, 1  ;;  %vm1624_vm6 = vcmp.eq.s32.totalorder %v3740_v36, 2  ;;  %vm1816_vm7 = vcmp.eq.s32.totalorder %v3740_v36, 3 }
 0x160   :  { %3342 = vmatpush3.bf16.msra.mxu0 %v3339_v43  ;;  %vm2010_vm8 = vcmp.eq.s32.totalorder %v3740_v36, 4  ;;  %vm2205_vm9 = vcmp.eq.s32.totalorder %v3740_v36, 5  ;;  %vm2400_vm10 = vcmp.eq.s32.totalorder %v3740_v36, 6  ;;  %vm2551_vm11 = vcmp.eq.s32.totalorder %v3740_v36, 7 }
 0x161   :  { %3344 = vmatprep.subr.bf16.mxu0 %v3343_v46  ;;  %vm2641_vm12 = vcmask 25600  }
 0x162   :  { %3139 = vmatpush3.bf16.msra.mxu1 %v3746_v39 }
 0x163   :  { %3152 = vmatprep.subr.bf16.mxu1 %v3562_v38 }
 0x164   :  { %3346 = vmatpush3.bf16.msra.mxu0 %v3343_v46 }
 0x165   :  { %3141 = vmatmul.mubr.bf16.vlgmr.msra.gmra.mrb[0].mxu1 %v3564_v47  ;;  %3144 = vmatprep.subr.bf16.mxu0 %v3562_v38 }
 0x166   :  { %3156 = vmatprep.mubr.msk.bf16.mxu1 %vm3563_vm2, %v3562_v38  ;;  %3153 = vmatpush3.bf16.msra.mxu1 %v3792_v6 }
 0x167   :  { %3134 = vmatmul.mubr.msk.f32.vlgmr.msra.gmra.mrb[0].mxu0 %vm892_vm3, %v880_v48  ;;  %3154 = vmatprep.subr.bf16.mxu1 %v3562_v38 }
 0x168   :  { %3145 = vmatpush3.bf16.msra.mxu0 %v3742_v37  ;;  %3148 = vmatprep.mubr.msk.bf16.mxu0 %vm3563_vm2, %v3562_v38 }
 0x169   :  { %3146 = vmatprep.subr.bf16.mxu0 %v3562_v38 }
 0x16a   :  { %3155 = vmatpush3.bf16.msra.mxu1 %v3798_v7 }
 0x16b   :  { %3168 = vmatprep.subr.bf16.mxu1 %v3562_v38 }
 0x16c   :  { %3147 = vmatpush3.bf16.msra.mxu0 %v3746_v39 }
 0x16d   :  { %3160 = vmatprep.subr.bf16.mxu0 %v3562_v38  ;;  %3157 = vmatmul.mubr.bf16.vlgmr.msra.gmra.mrb[4].mxu1 %v3564_v47 }
 0x16e   :  { %3169 = vmatpush3.bf16.msra.mxu1 %v3742_v37  ;;  %3172 = vmatprep.mubr.msk.bf16.mxu1 %vm3563_vm2, %v3562_v38 }
 0x16f   :  { %3170 = vmatprep.subr.bf16.mxu1 %v3562_v38 }
 0x172   :  { %3171 = vmatpush3.bf16.msra.mxu1 %v3746_v39 }
 0x173   :  { %3184 = vmatprep.subr.bf16.mxu1 %v3562_v38 }
 0x238   :  { %v1023_v49 = vpop.f32.mrb[0].mxu1 }
 0x239   :  { %v3142_v50 = vpop.f32.mrb[1].mxu1 }
 0x23a   :  { %v1026_v51 = vpop.f32.mrb[2].mxu1  ;;  %v3135_v54 = vpop.f32.mrb[0].mxu0 }
 0x23b   :  { %v3143_v52 = vpop.f32.mrb[3].mxu1  ;;  %v3779_v55 = vadd.f32 %v3135_v54, %v2977_v53  ;;  %v965_v56 = vpop.f32.mrb[1].mxu0 }
 0x23c   :  { %v3781_v57 = vadd.f32 %v2977_v53, %v965_v56 }
 0x23e   :  { %v1029_v58 = vadd.f32 %v1023_v49, %v3781_v57 }
 0x240   :  { %3363 = vtanh.f32 %v1029_v58  ;;  %v2982_v60 = vmul.f32 -1.442695, %v1029_v58  ;;  %v1151_v14 = vpop.f32.mrb[4].mxu1 }
 0x241   :  { %v3158_v15 = vpop.f32.mrb[5].mxu1 }
 0x242   :  { %3365 = vpow2.f32 %v2982_v60  ;;  %v1154_v16 = vpop.f32.mrb[6].mxu1 }
 0x243   :  { %v3159_v17 = vpop.f32.mrb[7].mxu1 }
 0x24a   :  { %v3364_v59 = vpop.eup %3363 }
 0x24b   :  { %1039 = vrot.lane.b32.xlu0 %v3364_v59, %s3565_s16 }
 0x24c   :  { %v3366_v61 = vpop.eup %3365 }
 0x24d   :  { %v1033_v62 = vadd.f32 1.0, %v3366_v61 }
 0x24f   :  { %3367 = vrcp.f32 %v1033_v62 }
 0x259   :  { %v3368_v63 = vpop.eup %3367 }
 0x25a   :  { %v1037_v2 = vmul.f32 0.0, %v3368_v63 }
 0x2bd   :  { %v1040_v0 = vpop.permute.xlu0 %1039 }
 0x2be   :  { %v1042_v1 = vmul.f32 %v3368_v63, %v1040_v0 }
 0x2c0   :  { %1044 = vrot.lane.b32.xlu0 %v1042_v1, %s3566_s4 }
 0x332   :  { %v1045_v3 = vpop.permute.xlu0 %1044 }
 0x333   :  { %v3786_v4 = vadd.f32 %v1045_v3, %v1037_v2 }
 0x335   :  { %3369 = vtanh.f32 %v3786_v4  ;;  %v1246_v49 = vrot.slane %v3786_v4, 6 }
 0x33f   :  { %v3370_v5 = vpop.eup %3369 }
 0x340   :  { %1050 = vrot.lane.b32.xlu1 %v3370_v5, %s3565_s16 }
 0x3b2   :  { %v1051_v8 = vpop.permute.xlu1 %1050 }
 0x3b3   :  { %v1053_v9 = vmul.f32 %v3368_v63, %v1051_v8 }
 0x3b5   :  { %v1054_v10 = vpack.c.bf16 %v1053_v9, %v1053_v9 }
 0x3b7   :  { %1056 = vrot.lane.b32.xlu1 %v1054_v10, %s3566_s4 }
 0x429   :  { %v1057_v12 = vpop.permute.xlu1 %1056 }
 0x42a   :  { %3149 = vmatmul.mubr.msk.bf16.vlgmr.msra.gmra.mrb[4].mxu0 %vm892_vm3, %v1057_v12 }
 0x42b   :  { %3161 = vmatpush3.bf16.msra.mxu0 %v3811_v11  ;;  %3164 = vmatprep.mubr.msk.bf16.mxu0 %vm3563_vm2, %v3562_v38 }
 0x42c   :  { %3162 = vmatprep.subr.bf16.mxu0 %v3562_v38 }
 0x42f   :  { %3163 = vmatpush3.bf16.msra.mxu0 %v3817_v13 }
 0x430   :  { %3176 = vmatprep.subr.bf16.mxu0 %v3562_v38 }
 0x432   :  { %3165 = vmatmul.mubr.msk.bf16.vlgmr.msra.gmra.mrb[8].mxu0 %vm892_vm3, %v1057_v12 }
 0x433   :  { %3177 = vmatpush3.bf16.msra.mxu0 %v3792_v6  ;;  %3180 = vmatprep.mubr.msk.bf16.mxu0 %vm3563_vm2, %v3562_v38 }
 0x434   :  { %3178 = vmatprep.subr.bf16.mxu0 %v3562_v38 }
 0x437   :  { %3179 = vmatpush3.bf16.msra.mxu0 %v3798_v7 }
 0x438   :  { %3192 = vmatprep.subr.bf16.mxu0 %v3562_v38 }
 0x4fd   :  { %v1095_v18 = vpop.f32.mrb[4].mxu0 }
 0x4fe   :  { %v1102_v19 = vrot.slane %v1095_v18, 6  ;;  %v3150_v20 = vpop.f32.mrb[5].mxu0 }
 0x4ff   :  { %v1098_v21 = vpop.f32.mrb[6].mxu0 }
 0x500   :  { %v1104_v22 = vadd.f32 %v1102_v19, %v3781_v57  ;;  %v3151_v23 = vpop.f32.mrb[7].mxu0 }
 0x502   :  { %3371 = vtanh.f32 %v1104_v22  ;;  %v2990_v33 = vmul.f32 -1.442695, %v1104_v22 }
 0x505   :  { %v1203_v24 = vpop.f32.mrb[8].mxu0 }
 0x506   :  { %v1204_v25 = vadd.f32 %v1203_v24, %v1151_v14  ;;  %v3166_v26 = vpop.f32.mrb[9].mxu0 }
 0x507   :  { %v1206_v27 = vpop.f32.mrb[10].mxu0 }
 0x508   :  { %v1209_v29 = vadd.f32 %v3735_v28, %v1204_v25  ;;  %v3167_v30 = vpop.f32.mrb[11].mxu0 }
 0x50a   :  { %3373 = vtanh.f32 %v1209_v29  ;;  %v2989_v34 = vmul.f32 -1.442695, %v1209_v29 }
 0x50b   :  { %3375 = vpow2.f32 %v2990_v33 }
 0x50c   :  { %v3372_v31 = vpop.eup %3371  ;;  %3377 = vpow2.f32 %v2989_v34 }
 0x50d   :  { %1250 = vrot.lane.b32.xlu0 %v3372_v31, %s3565_s16 }
 0x514   :  { %v3374_v32 = vpop.eup %3373 }
 0x515   :  { %1219 = vrot.lane.b32.xlu1 %v3374_v32, %s3565_s16  ;;  %v3376_v35 = vpop.eup %3375 }
 0x516   :  { %v1241_v40 = vadd.f32 1.0, %v3376_v35  ;;  %v3378_v41 = vpop.eup %3377 }
 0x517   :  { %v1213_v42 = vadd.f32 1.0, %v3378_v41 }
 0x518   :  { %3379 = vrcp.f32 %v1241_v40 }
 0x519   :  { %3381 = vrcp.f32 %v1213_v42 }
 0x522   :  { %v3380_v43 = vpop.eup %3379 }
 0x523   :  { %v3382_v46 = vpop.eup %3381  ;;  %v1248_v50 = vmul.f32 %v3380_v43, %v1246_v49 }
 0x524   :  { %v1217_v53 = vmul.f32 0.0, %v3382_v46 }
 0x57f   :  { %v1251_v44 = vpop.permute.xlu0 %1250 }
 0x580   :  { %v1253_v45 = vmul.f32 %v3380_v43, %v1251_v44 }
 0x582   :  { %1255 = vrot.lane.b32.xlu0 %v1253_v45, %s3566_s4 }
 0x587   :  { %v1220_v47 = vpop.permute.xlu1 %1219 }
 0x588   :  { %v1222_v48 = vmul.f32 %v3382_v46, %v1220_v47 }
 0x58a   :  { %1224 = vrot.lane.b32.xlu1 %v1222_v48, %s3566_s4 }
 0x5f4   :  { %v1256_v51 = vpop.permute.xlu0 %1255 }
 0x5f5   :  { %v3838_v52 = vadd.f32 %v1256_v51, %v1248_v50 }
 0x5f7   :  { %3383 = vtanh.f32 %v3838_v52  ;;  %v1441_v44 = vrot.slane %v3838_v52, 6 }
 0x5fc   :  { %v1225_v54 = vpop.permute.xlu1 %1224 }
 0x5fd   :  { %v3841_v56 = vadd.f32 %v1225_v54, %v1217_v53 }
 0x5ff   :  { %3385 = vtanh.f32 %v3841_v56 }
 0x601   :  { %v3384_v58 = vpop.eup %3383 }
 0x602   :  { %1261 = vrot.lane.b32.xlu0 %v3384_v58, %s3565_s16 }
 0x609   :  { %v3386_v59 = vpop.eup %3385 }
 0x60a   :  { %1230 = vrot.lane.b32.xlu1 %v3386_v59, %s3565_s16 }
 0x674   :  { %v1262_v60 = vpop.permute.xlu0 %1261 }
 0x675   :  { %v1264_v61 = vmul.f32 %v3380_v43, %v1262_v60 }
 0x677   :  { %v1265_v62 = vpack.c.bf16 %v1264_v61, %v1264_v61 }
 0x679   :  { %v1268_v63 = vrot.slane %v1265_v62, 1 }
 0x67b   :  { %1269 = vrot.lane.b32.xlu0 %v1268_v63, %s3566_s4 }
 0x67c   :  { %v1231_v0 = vpop.permute.xlu1 %1230 }
 0x67d   :  { %v3847_v1 = vmul.f32 %v3382_v46, %v1231_v0 }
 0x67f   :  { %v1266_v2 = vpack.c.bf16 %v3847_v1, %v3847_v1  ;;  %v1237_v61 = vsel %vm1234_vm4, %v3847_v1, 0.0 }
 0x681   :  { %1319 = vrot.lane.b32.xlu1 %v1266_v2, %s3566_s4 }
 0x6ed   :  { %v1270_v3 = vpop.permute.xlu0 %1269 }
 0x6ee   :  { %3173 = vmatmul.mubr.msk.bf16.vlgmr.msra.gmra.mrb[8].mxu1 %vm892_vm3, %v1270_v3 }
 0x6ef   :  { %3185 = vmatpush3.bf16.msra.mxu1 %v3811_v11  ;;  %3188 = vmatprep.mubr.msk.bf16.mxu1 %vm3563_vm2, %v3562_v38 }
 0x6f0   :  { %3186 = vmatprep.subr.bf16.mxu1 %v3562_v38 }
 0x6f3   :  { %3187 = vmatpush3.bf16.msra.mxu1 %v3817_v13  ;;  %v1320_v4 = vpop.permute.xlu1 %1319 }
 0x6f4   :  { %3181 = vmatmul.mubr.msk.bf16.vlgmr.msra.gmra.mrb[12].mxu0 %vm892_vm3, %v1320_v4  ;;  %3200 = vmatprep.subr.bf16.mxu1 %v3562_v38 }
 0x6f5   :  { %3193 = vmatpush3.bf16.msra.mxu0 %v3742_v37  ;;  %3196 = vmatprep.mubr.msk.bf16.mxu0 %vm3563_vm2, %v3562_v38 }
 0x6f6   :  { %3189 = vmatmul.mubr.msk.bf16.vlgmr.msra.gmra.mrb[12].mxu1 %vm892_vm3, %v1270_v3  ;;  %3194 = vmatprep.subr.bf16.mxu0 %v3562_v38 }
 0x6f7   :  { %3201 = vmatpush3.bf16.msra.mxu1 %v3792_v6  ;;  %3204 = vmatprep.mubr.msk.bf16.mxu1 %vm3563_vm2, %v3562_v38 }
 0x6f8   :  { %3202 = vmatprep.subr.bf16.mxu1 %v3562_v38 }
 0x6f9   :  { %3195 = vmatpush3.bf16.msra.mxu0 %v3746_v39 }
 0x6fa   :  { %3208 = vmatprep.subr.bf16.mxu0 %v3562_v38 }
 0x6fb   :  { %3203 = vmatpush3.bf16.msra.mxu1 %v3798_v7 }
 0x6fc   :  { %3216 = vmatprep.subr.bf16.mxu1 %v3562_v38 }
 0x7c1   :  { %v1308_v5 = vpop.f32.mrb[8].mxu1 }
 0x7c2   :  { %v1315_v8 = vrot.slane %v1308_v5, 4  ;;  %v3174_v9 = vpop.f32.mrb[9].mxu1 }
 0x7c3   :  { %v1311_v10 = vpop.f32.mrb[10].mxu1 }
 0x7c4   :  { %v1317_v12 = vadd.f32 %v1315_v8, %v3781_v57  ;;  %v3175_v14 = vpop.f32.mrb[11].mxu1 }
 0x7c6   :  { %3387 = vtanh.f32 %v1317_v12  ;;  %v2995_v27 = vmul.f32 -1.442695, %v1317_v12 }
 0x7c7   :  { %v1358_v15 = vpop.f32.mrb[12].mxu0 }
 0x7c8   :  { %v3182_v16 = vpop.f32.mrb[13].mxu0 }
 0x7c9   :  { %v1361_v17 = vpop.f32.mrb[14].mxu0  ;;  %v1398_v18 = vpop.f32.mrb[12].mxu1 }
 0x7ca   :  { %v1399_v19 = vadd.f32 %v1398_v18, %v1358_v15  ;;  %v3183_v20 = vpop.f32.mrb[15].mxu0  ;;  %v3190_v21 = vpop.f32.mrb[13].mxu1 }
 0x7cb   :  { %v1401_v22 = vpop.f32.mrb[14].mxu1 }
 0x7cc   :  { %v1404_v23 = vadd.f32 %v3735_v28, %v1399_v19  ;;  %v3191_v24 = vpop.f32.mrb[15].mxu1 }
 0x7ce   :  { %3389 = vtanh.f32 %v1404_v23  ;;  %v2994_v29 = vmul.f32 -1.442695, %v1404_v23 }
 0x7cf   :  { %3391 = vpow2.f32 %v2995_v27 }
 0x7d0   :  { %v3388_v25 = vpop.eup %3387  ;;  %3393 = vpow2.f32 %v2994_v29 }
 0x7d1   :  { %1445 = vrot.lane.b32.xlu0 %v3388_v25, %s3565_s16 }
 0x7d8   :  { %v3390_v26 = vpop.eup %3389 }
 0x7d9   :  { %1414 = vrot.lane.b32.xlu1 %v3390_v26, %s3565_s16  ;;  %v3392_v30 = vpop.eup %3391 }
 0x7da   :  { %v1436_v31 = vadd.f32 1.0, %v3392_v30  ;;  %v3394_v32 = vpop.eup %3393 }
 0x7db   :  { %v1408_v33 = vadd.f32 1.0, %v3394_v32 }
 0x7dc   :  { %3395 = vrcp.f32 %v1436_v31 }
 0x7dd   :  { %3397 = vrcp.f32 %v1408_v33 }
 0x7e6   :  { %v3396_v34 = vpop.eup %3395 }
 0x7e7   :  { %v3398_v41 = vpop.eup %3397  ;;  %v1443_v45 = vmul.f32 %v3396_v34, %v1441_v44 }
 0x7e8   :  { %v1412_v48 = vmul.f32 %v3398_v41, %v3841_v56 }
 0x843   :  { %v1446_v35 = vpop.permute.xlu0 %1445 }
 0x844   :  { %v1448_v40 = vmul.f32 %v3396_v34, %v1446_v35 }
 0x846   :  { %1450 = vrot.lane.b32.xlu0 %v1448_v40, %s3566_s4 }
 0x84b   :  { %v1415_v42 = vpop.permute.xlu1 %1414 }
 0x84c   :  { %v1417_v43 = vmul.f32 %v3398_v41, %v1415_v42 }
 0x84e   :  { %1419 = vrot.lane.b32.xlu1 %v1417_v43, %s3566_s4 }
 0x8b8   :  { %v1451_v46 = vpop.permute.xlu0 %1450 }
 0x8b9   :  { %v3880_v47 = vadd.f32 %v1451_v46, %v1443_v45 }
 0x8bb   :  { %3399 = vtanh.f32 %v3880_v47  ;;  %v1636_v40 = vrot.slane %v3880_v47, 6 }
 0x8c0   :  { %v1420_v49 = vpop.permute.xlu1 %1419 }
 0x8c1   :  { %v3884_v50 = vadd.f32 %v1420_v49, %v1412_v48 }
 0x8c3   :  { %3401 = vtanh.f32 %v3884_v50 }
 0x8c5   :  { %v3400_v51 = vpop.eup %3399 }
 0x8c6   :  { %1456 = vrot.lane.b32.xlu0 %v3400_v51, %s3565_s16 }
 0x8cd   :  { %v3402_v53 = vpop.eup %3401 }
 0x8ce   :  { %1425 = vrot.lane.b32.xlu1 %v3402_v53, %s3565_s16 }
 0x938   :  { %v1457_v52 = vpop.permute.xlu0 %1456 }
 0x939   :  { %v1459_v54 = vmul.f32 %v3396_v34, %v1457_v52 }
 0x93b   :  { %v1460_v58 = vpack.c.bf16 %v1459_v54, %v1459_v54 }
 0x93d   :  { %v1463_v59 = vrot.slane %v1460_v58, 2 }
 0x93f   :  { %1464 = vrot.lane.b32.xlu0 %v1463_v59, %s3566_s4 }
 0x940   :  { %v1426_v56 = vpop.permute.xlu1 %1425 }
 0x941   :  { %v1428_v60 = vmul.f32 %v3398_v41, %v1426_v56 }
 0x943   :  { %v3893_v62 = vsel %vm1429_vm5, %v1428_v60, %v1237_v61  ;;  %v1461_v63 = vpack.c.bf16 %v1428_v60, %v1428_v60 }
 0x945   :  { %1514 = vrot.lane.b32.xlu1 %v1461_v63, %s3566_s4 }
 0x9b1   :  { %v1465_v0 = vpop.permute.xlu0 %1464 }
 0x9b2   :  { %3197 = vmatmul.mubr.msk.bf16.vlgmr.msra.gmra.mrb[16].mxu0 %vm892_vm3, %v1465_v0 }
 0x9b3   :  { %3209 = vmatpush3.bf16.msra.mxu0 %v3811_v11  ;;  %3212 = vmatprep.mubr.msk.bf16.mxu0 %vm3563_vm2, %v3562_v38 }
 0x9b4   :  { %3210 = vmatprep.subr.bf16.mxu0 %v3562_v38 }
 0x9b7   :  { %3211 = vmatpush3.bf16.msra.mxu0 %v3817_v13  ;;  %v1515_v2 = vpop.permute.xlu1 %1514 }
 0x9b8   :  { %3205 = vmatmul.mubr.msk.bf16.vlgmr.msra.gmra.mrb[16].mxu1 %vm892_vm3, %v1515_v2  ;;  %3224 = vmatprep.subr.bf16.mxu0 %v3562_v38 }
 0x9b9   :  { %3217 = vmatpush3.bf16.msra.mxu1 %v3742_v37  ;;  %3220 = vmatprep.mubr.msk.bf16.mxu1 %vm3563_vm2, %v3562_v38 }
 0x9ba   :  { %3213 = vmatmul.mubr.msk.bf16.vlgmr.msra.gmra.mrb[20].mxu0 %vm892_vm3, %v1465_v0  ;;  %3218 = vmatprep.subr.bf16.mxu1 %v3562_v38 }
 0x9bb   :  { %3225 = vmatpush3.bf16.msra.mxu0 %v3792_v6  ;;  %3228 = vmatprep.mubr.msk.bf16.mxu0 %vm3563_vm2, %v3562_v38 }
 0x9bc   :  { %3226 = vmatprep.subr.bf16.mxu0 %v3562_v38 }
 0x9bd   :  { %3219 = vmatpush3.bf16.msra.mxu1 %v3746_v39 }
 0x9be   :  { %3232 = vmatprep.subr.bf16.mxu1 %v3562_v38 }
 0x9bf   :  { %3227 = vmatpush3.bf16.msra.mxu0 %v3798_v7 }
 0x9c0   :  { %3240 = vmatprep.subr.bf16.mxu0 %v3562_v38 }
 0xa85   :  { %v1503_v1 = vpop.f32.mrb[16].mxu0 }
 0xa86   :  { %v1510_v3 = vrot.slane %v1503_v1, 2  ;;  %v3198_v4 = vpop.f32.mrb[17].mxu0 }
 0xa87   :  { %v1506_v5 = vpop.f32.mrb[18].mxu0 }
 0xa88   :  { %v1512_v8 = vadd.f32 %v1510_v3, %v3781_v57  ;;  %v3199_v9 = vpop.f32.mrb[19].mxu0 }
 0xa8a   :  { %3403 = vtanh.f32 %v1512_v8  ;;  %v3000_v57 = vmul.f32 -1.442695, %v1512_v8 }
 0xa8b   :  { %v1553_v10 = vpop.f32.mrb[16].mxu1 }
 0xa8c   :  { %v3206_v12 = vpop.f32.mrb[17].mxu1 }
 0xa8d   :  { %v1556_v14 = vpop.f32.mrb[18].mxu1  ;;  %v1593_v15 = vpop.f32.mrb[20].mxu0 }
 0xa8e   :  { %v1594_v16 = vadd.f32 %v1593_v15, %v1553_v10  ;;  %v3207_v17 = vpop.f32.mrb[19].mxu1  ;;  %v3214_v18 = vpop.f32.mrb[21].mxu0 }
 0xa8f   :  { %v1596_v19 = vpop.f32.mrb[22].mxu0 }
 0xa90   :  { %v1599_v20 = vadd.f32 %v3735_v28, %v1594_v16  ;;  %v3215_v21 = vpop.f32.mrb[23].mxu0 }
 0xa92   :  { %3405 = vtanh.f32 %v1599_v20  ;;  %v2999_v24 = vmul.f32 -1.442695, %v1599_v20 }
 0xa93   :  { %3407 = vpow2.f32 %v3000_v57 }
 0xa94   :  { %v3404_v22 = vpop.eup %3403  ;;  %3409 = vpow2.f32 %v2999_v24 }
 0xa95   :  { %1640 = vrot.lane.b32.xlu0 %v3404_v22, %s3565_s16 }
 0xa9c   :  { %v3406_v23 = vpop.eup %3405 }
 0xa9d   :  { %1609 = vrot.lane.b32.xlu1 %v3406_v23, %s3565_s16  ;;  %v3408_v25 = vpop.eup %3407 }
 0xa9e   :  { %v1631_v26 = vadd.f32 1.0, %v3408_v25  ;;  %v3410_v27 = vpop.eup %3409 }
 0xa9f   :  { %v1603_v29 = vadd.f32 1.0, %v3410_v27 }
 0xaa0   :  { %3411 = vrcp.f32 %v1631_v26 }
 0xaa1   :  { %3413 = vrcp.f32 %v1603_v29 }
 0xaaa   :  { %v3412_v30 = vpop.eup %3411 }
 0xaab   :  { %v3414_v33 = vpop.eup %3413  ;;  %v1638_v41 = vmul.f32 %v3412_v30, %v1636_v40 }
 0xaac   :  { %v1607_v44 = vmul.f32 %v3414_v33, %v3884_v50 }
 0xb07   :  { %v1641_v31 = vpop.permute.xlu0 %1640 }
 0xb08   :  { %v1643_v32 = vmul.f32 %v3412_v30, %v1641_v31 }
 0xb0a   :  { %1645 = vrot.lane.b32.xlu0 %v1643_v32, %s3566_s4 }
 0xb0f   :  { %v1610_v34 = vpop.permute.xlu1 %1609 }
 0xb10   :  { %v1612_v35 = vmul.f32 %v3414_v33, %v1610_v34 }
 0xb12   :  { %1614 = vrot.lane.b32.xlu1 %v1612_v35, %s3566_s4 }
 0xb7c   :  { %v1646_v42 = vpop.permute.xlu0 %1645 }
 0xb7d   :  { %v3924_v43 = vadd.f32 %v1646_v42, %v1638_v41 }
 0xb7f   :  { %3415 = vtanh.f32 %v3924_v43 }
 0xb84   :  { %v1615_v45 = vpop.permute.xlu1 %1614 }
 0xb85   :  { %v3928_v46 = vadd.f32 %v1615_v45, %v1607_v44 }
 0xb87   :  { %3417 = vtanh.f32 %v3928_v46 }
 0xb89   :  { %v3416_v48 = vpop.eup %3415 }
 0xb8a   :  { %1651 = vrot.lane.b32.xlu0 %v3416_v48, %s3565_s16 }
 0xb91   :  { %v3418_v49 = vpop.eup %3417 }
 0xb92   :  { %1620 = vrot.lane.b32.xlu1 %v3418_v49, %s3565_s16 }
 0xbfc   :  { %v1652_v47 = vpop.permute.xlu0 %1651 }
 0xbfd   :  { %v1654_v51 = vmul.f32 %v3412_v30, %v1652_v47  ;;  %v1828_v30 = vrot.slane %v3924_v43, 6 }
 0xbff   :  { %v1655_v53 = vpack.c.bf16 %v1654_v51, %v1654_v51 }
 0xc01   :  { %v1658_v52 = vrot.slane %v1655_v53, 3 }
 0xc03   :  { %1659 = vrot.lane.b32.xlu0 %v1658_v52, %s3566_s4 }
 0xc04   :  { %v1621_v50 = vpop.permute.xlu1 %1620 }
 0xc05   :  { %v1623_v54 = vmul.f32 %v3414_v33, %v1621_v50 }
 0xc07   :  { %v3936_v58 = vsel %vm1624_vm6, %v1623_v54, %v3893_v62  ;;  %v1656_v59 = vpack.c.bf16 %v1623_v54, %v1623_v54 }
 0xc09   :  { %1706 = vrot.lane.b32.xlu1 %v1656_v59, %s3566_s4 }
 0xc75   :  { %v1660_v56 = vpop.permute.xlu0 %1659 }
 0xc76   :  { %3221 = vmatmul.mubr.msk.bf16.vlgmr.msra.gmra.mrb[20].mxu1 %vm892_vm3, %v1660_v56 }
 0xc77   :  { %3233 = vmatpush3.bf16.msra.mxu1 %v3811_v11  ;;  %3236 = vmatprep.mubr.msk.bf16.mxu1 %vm3563_vm2, %v3562_v38 }
 0xc78   :  { %3234 = vmatprep.subr.bf16.mxu1 %v3562_v38 }
 0xc7b   :  { %3235 = vmatpush3.bf16.msra.mxu1 %v3817_v13  ;;  %v1707_v60 = vpop.permute.xlu1 %1706 }
 0xc7c   :  { %3229 = vmatmul.mubr.msk.bf16.vlgmr.msra.gmra.mrb[24].mxu0 %vm892_vm3, %v1707_v60  ;;  %3248 = vmatprep.subr.bf16.mxu1 %v3562_v38 }
 0xc7d   :  { %3241 = vmatpush3.bf16.msra.mxu0 %v3742_v37  ;;  %3244 = vmatprep.mubr.msk.bf16.mxu0 %vm3563_vm2, %v3562_v38 }
 0xc7e   :  { %3237 = vmatmul.mubr.msk.bf16.vlgmr.msra.gmra.mrb[24].mxu1 %vm892_vm3, %v1660_v56  ;;  %3242 = vmatprep.subr.bf16.mxu0 %v3562_v38 }
 0xc7f   :  { %3249 = vmatpush3.bf16.msra.mxu1 %v3792_v6  ;;  %3252 = vmatprep.mubr.msk.bf16.mxu1 %vm3563_vm2, %v3562_v38 }
 0xc80   :  { %3250 = vmatprep.subr.bf16.mxu1 %v3562_v38 }
 0xc81   :  { %3243 = vmatpush3.bf16.msra.mxu0 %v3746_v39 }
 0xc82   :  { %3256 = vmatprep.subr.bf16.mxu0 %v3562_v38 }
 0xc83   :  { %3251 = vmatpush3.bf16.msra.mxu1 %v3798_v7 }
 0xc84   :  { %3264 = vmatprep.subr.bf16.mxu1 %v3562_v38 }
 0xd49   :  { %v1698_v61 = vpop.f32.mrb[20].mxu1 }
 0xd4a   :  { %v1704_v62 = vadd.f32 %v1698_v61, %v3779_v55  ;;  %v3222_v63 = vpop.f32.mrb[21].mxu1 }
 0xd4b   :  { %v1701_v0 = vpop.f32.mrb[22].mxu1 }
 0xd4c   :  { %3419 = vtanh.f32 %v1704_v62  ;;  %v3223_v2 = vpop.f32.mrb[23].mxu1  ;;  %v3005_v18 = vmul.f32 -1.442695, %v1704_v62 }
 0xd4f   :  { %v1745_v1 = vpop.f32.mrb[24].mxu0 }
 0xd50   :  { %v3230_v3 = vpop.f32.mrb[25].mxu0 }
 0xd51   :  { %v1748_v4 = vpop.f32.mrb[26].mxu0  ;;  %v1785_v5 = vpop.f32.mrb[24].mxu1 }
 0xd52   :  { %v1786_v8 = vadd.f32 %v1785_v5, %v1745_v1  ;;  %v3231_v9 = vpop.f32.mrb[27].mxu0  ;;  %v3238_v10 = vpop.f32.mrb[25].mxu1 }
 0xd53   :  { %v1788_v12 = vpop.f32.mrb[26].mxu1 }
 0xd54   :  { %v1791_v14 = vadd.f32 %v3735_v28, %v1786_v8  ;;  %v3239_v15 = vpop.f32.mrb[27].mxu1 }
 0xd56   :  { %v3420_v16 = vpop.eup %3419  ;;  %3421 = vtanh.f32 %v1791_v14  ;;  %v3004_v19 = vmul.f32 -1.442695, %v1791_v14 }
 0xd57   :  { %1832 = vrot.lane.b32.xlu0 %v3420_v16, %s3565_s16  ;;  %3423 = vpow2.f32 %v3005_v18 }
 0xd58   :  { %3425 = vpow2.f32 %v3004_v19 }
 0xd60   :  { %v3422_v17 = vpop.eup %3421 }
 0xd61   :  { %1801 = vrot.lane.b32.xlu1 %v3422_v17, %s3565_s16  ;;  %v3424_v20 = vpop.eup %3423 }
 0xd62   :  { %v1823_v21 = vadd.f32 1.0, %v3424_v20  ;;  %v3426_v22 = vpop.eup %3425 }
 0xd63   :  { %v1795_v23 = vadd.f32 1.0, %v3426_v22 }
 0xd64   :  { %3427 = vrcp.f32 %v1823_v21 }
 0xd65   :  { %3429 = vrcp.f32 %v1795_v23 }
 0xd6e   :  { %v3428_v57 = vpop.eup %3427 }
 0xd6f   :  { %v3430_v26 = vpop.eup %3429  ;;  %v1830_v31 = vmul.f32 %v3428_v57, %v1828_v30 }
 0xd70   :  { %v1799_v34 = vmul.f32 %v3430_v26, %v3928_v46 }
 0xdc9   :  { %v1833_v24 = vpop.permute.xlu0 %1832 }
 0xdca   :  { %v1835_v25 = vmul.f32 %v3428_v57, %v1833_v24 }
 0xdcc   :  { %1837 = vrot.lane.b32.xlu0 %v1835_v25, %s3566_s4 }
 0xdd3   :  { %v1802_v27 = vpop.permute.xlu1 %1801 }
 0xdd4   :  { %v1804_v29 = vmul.f32 %v3430_v26, %v1802_v27 }
 0xdd6   :  { %1806 = vrot.lane.b32.xlu1 %v1804_v29, %s3566_s4 }
 0xe3e   :  { %v1838_v32 = vpop.permute.xlu0 %1837 }
 0xe3f   :  { %v3967_v33 = vadd.f32 %v1838_v32, %v1830_v31 }
 0xe41   :  { %3431 = vtanh.f32 %v3967_v33 }
 0xe48   :  { %v1807_v35 = vpop.permute.xlu1 %1806 }
 0xe49   :  { %v3971_v40 = vadd.f32 %v1807_v35, %v1799_v34 }
 0xe4b   :  { %v3432_v41 = vpop.eup %3431  ;;  %3433 = vtanh.f32 %v3971_v40 }
 0xe4c   :  { %1843 = vrot.lane.b32.xlu0 %v3432_v41, %s3565_s16 }
 0xe55   :  { %v3434_v42 = vpop.eup %3433 }
 0xe56   :  { %1812 = vrot.lane.b32.xlu1 %v3434_v42, %s3565_s16 }
 0xebe   :  { %v1844_v43 = vpop.permute.xlu0 %1843 }
 0xebf   :  { %v1846_v44 = vmul.f32 %v3428_v57, %v1844_v43  ;;  %v2022_v57 = vrot.slane %v3967_v33, 6 }
 0xec1   :  { %v1847_v45 = vpack.c.bf16 %v1846_v44, %v1846_v44 }
 0xec3   :  { %1850 = vrot.lane.b32.xlu0 %v1847_v45, %s3566_s4 }
 0xec8   :  { %v1813_v48 = vpop.permute.xlu1 %1812 }
 0xec9   :  { %v1815_v46 = vmul.f32 %v3430_v26, %v1813_v48 }
 0xecb   :  { %v3979_v49 = vsel %vm1816_vm7, %v1815_v46, %v3936_v58  ;;  %v1848_v47 = vpack.c.bf16 %v1815_v46, %v1815_v46 }
 0xecd   :  { %1900 = vrot.lane.b32.xlu1 %v1848_v47, %s3566_s4 }
 0xf35   :  { %v1851_v51 = vpop.permute.xlu0 %1850 }
 0xf36   :  { %3245 = vmatmul.mubr.msk.bf16.vlgmr.msra.gmra.mrb[28].mxu0 %vm892_vm3, %v1851_v51 }
 0xf37   :  { %3257 = vmatpush3.bf16.msra.mxu0 %v3811_v11  ;;  %3260 = vmatprep.mubr.msk.bf16.mxu0 %vm3563_vm2, %v3562_v38 }
 0xf38   :  { %3258 = vmatprep.subr.bf16.mxu0 %v3562_v38 }
 0xf3b   :  { %3259 = vmatpush3.bf16.msra.mxu0 %v3817_v13 }
 0xf3c   :  { %3272 = vmatprep.subr.bf16.mxu0 %v3562_v38 }
 0xf3e   :  { %3261 = vmatmul.mubr.msk.bf16.vlgmr.msra.gmra.mrb[32].mxu0 %vm892_vm3, %v1851_v51 }
 0xf3f   :  { %v1901_v53 = vpop.permute.xlu1 %1900  ;;  %3273 = vmatpush3.bf16.msra.mxu0 %v3792_v6  ;;  %3276 = vmatprep.mubr.msk.bf16.mxu0 %vm3563_vm2, %v3562_v38 }
 0xf40   :  { %3253 = vmatmul.mubr.msk.bf16.vlgmr.msra.gmra.mrb[28].mxu1 %vm892_vm3, %v1901_v53  ;;  %3274 = vmatprep.subr.bf16.mxu0 %v3562_v38 }
 0xf41   :  { %3265 = vmatpush3.bf16.msra.mxu1 %v3742_v37  ;;  %3268 = vmatprep.mubr.msk.bf16.mxu1 %vm3563_vm2, %v3562_v38 }
 0xf42   :  { %3266 = vmatprep.subr.bf16.mxu1 %v3562_v38 }
 0xf43   :  { %3275 = vmatpush3.bf16.msra.mxu0 %v3798_v7 }
 0xf44   :  { %3288 = vmatprep.subr.bf16.mxu0 %v3562_v38 }
 0xf45   :  { %3267 = vmatpush3.bf16.msra.mxu1 %v3746_v39 }
 0xf46   :  { %3280 = vmatprep.subr.bf16.mxu1 %v3562_v38 }
0x1009   :  { %v1889_v52 = vpop.f32.mrb[28].mxu0 }
0x100a   :  { %v1896_v50 = vrot.slane %v1889_v52, 6  ;;  %v3246_v54 = vpop.f32.mrb[29].mxu0 }
0x100b   :  { %v1892_v58 = vpop.f32.mrb[30].mxu0 }
0x100c   :  { %v1898_v59 = vadd.f32 %v1896_v50, %v3779_v55  ;;  %v3247_v56 = vpop.f32.mrb[31].mxu0 }
0x100e   :  { %3435 = vtanh.f32 %v1898_v59  ;;  %v3010_v10 = vmul.f32 -1.442695, %v1898_v59 }
0x1011   :  { %v1979_v60 = vpop.f32.mrb[32].mxu0 }
0x1012   :  { %v3262_v61 = vpop.f32.mrb[33].mxu0 }
0x1013   :  { %v1939_v62 = vpop.f32.mrb[28].mxu1  ;;  %v1982_v63 = vpop.f32.mrb[34].mxu0 }
0x1014   :  { %v1980_v0 = vadd.f32 %v1979_v60, %v1939_v62  ;;  %v3254_v2 = vpop.f32.mrb[29].mxu1  ;;  %v3263_v1 = vpop.f32.mrb[35].mxu0 }
0x1015   :  { %v1942_v3 = vpop.f32.mrb[30].mxu1 }
0x1016   :  { %v1985_v4 = vadd.f32 %v3735_v28, %v1980_v0  ;;  %v3255_v5 = vpop.f32.mrb[31].mxu1 }
0x1018   :  { %v3436_v8 = vpop.eup %3435  ;;  %3437 = vtanh.f32 %v1985_v4  ;;  %v3009_v12 = vmul.f32 -1.442695, %v1985_v4 }
0x1019   :  { %2026 = vrot.lane.b32.xlu0 %v3436_v8, %s3565_s16  ;;  %3439 = vpow2.f32 %v3010_v10 }
0x101a   :  { %3441 = vpow2.f32 %v3009_v12 }
0x1022   :  { %v3438_v9 = vpop.eup %3437 }
0x1023   :  { %1995 = vrot.lane.b32.xlu1 %v3438_v9, %s3565_s16  ;;  %v3440_v14 = vpop.eup %3439 }
0x1024   :  { %v2017_v15 = vadd.f32 1.0, %v3440_v14  ;;  %v3442_v16 = vpop.eup %3441 }
0x1025   :  { %v1989_v17 = vadd.f32 1.0, %v3442_v16 }
0x1026   :  { %3443 = vrcp.f32 %v2017_v15 }
0x1027   :  { %3445 = vrcp.f32 %v1989_v17 }
0x1030   :  { %v3444_v18 = vpop.eup %3443 }
0x1031   :  { %v3446_v21 = vpop.eup %3445  ;;  %v2024_v24 = vmul.f32 %v3444_v18, %v2022_v57 }
0x1032   :  { %v1993_v27 = vmul.f32 %v3446_v21, %v3971_v40 }
0x108b   :  { %v2027_v19 = vpop.permute.xlu0 %2026 }
0x108c   :  { %v2029_v20 = vmul.f32 %v3444_v18, %v2027_v19 }
0x108e   :  { %2031 = vrot.lane.b32.xlu0 %v2029_v20, %s3566_s4 }
0x1095   :  { %v1996_v22 = vpop.permute.xlu1 %1995 }
0x1096   :  { %v1998_v23 = vmul.f32 %v3446_v21, %v1996_v22 }
0x1098   :  { %2000 = vrot.lane.b32.xlu1 %v1998_v23, %s3566_s4 }
0x1100   :  { %v2032_v25 = vpop.permute.xlu0 %2031 }
0x1101   :  { %v4010_v26 = vadd.f32 %v2032_v25, %v2024_v24 }
0x1103   :  { %3447 = vtanh.f32 %v4010_v26  ;;  %v2217_v17 = vrot.slane %v4010_v26, 6 }
0x110a   :  { %v2001_v29 = vpop.permute.xlu1 %2000 }
0x110b   :  { %v4014_v30 = vadd.f32 %v2001_v29, %v1993_v27 }
0x110d   :  { %v3448_v31 = vpop.eup %3447  ;;  %3449 = vtanh.f32 %v4014_v30 }
0x110e   :  { %2037 = vrot.lane.b32.xlu0 %v3448_v31, %s3565_s16 }
0x1117   :  { %v3450_v32 = vpop.eup %3449 }
0x1118   :  { %2006 = vrot.lane.b32.xlu1 %v3450_v32, %s3565_s16 }
0x1180   :  { %v2038_v33 = vpop.permute.xlu0 %2037 }
0x1181   :  { %v2040_v34 = vmul.f32 %v3444_v18, %v2038_v33 }
0x1183   :  { %v2041_v35 = vpack.c.bf16 %v2040_v34, %v2040_v34 }
0x1185   :  { %v2044_v41 = vrot.slane %v2041_v35, 1 }
0x1187   :  { %2045 = vrot.lane.b32.xlu0 %v2044_v41, %s3566_s4 }
0x118a   :  { %v2007_v40 = vpop.permute.xlu1 %2006 }
0x118b   :  { %v2009_v42 = vmul.f32 %v3446_v21, %v2007_v40 }
0x118d   :  { %v4022_v43 = vsel %vm2010_vm8, %v2009_v42, %v3979_v49  ;;  %v2042_v44 = vpack.c.bf16 %v2009_v42, %v2009_v42 }
0x118f   :  { %2095 = vrot.lane.b32.xlu1 %v2042_v44, %s3566_s4 }
0x11f9   :  { %v2046_v45 = vpop.permute.xlu0 %2045 }
0x11fa   :  { %3269 = vmatmul.mubr.msk.bf16.vlgmr.msra.gmra.mrb[32].mxu1 %vm892_vm3, %v2046_v45 }
0x11fb   :  { %3281 = vmatpush3.bf16.msra.mxu1 %v3811_v11  ;;  %3284 = vmatprep.mubr.msk.bf16.mxu1 %vm3563_vm2, %v3562_v38 }
0x11fc   :  { %3282 = vmatprep.subr.bf16.mxu1 %v3562_v38 }
0x11ff   :  { %3283 = vmatpush3.bf16.msra.mxu1 %v3817_v13 }
0x1200   :  { %3296 = vmatprep.subr.bf16.mxu1 %v3562_v38 }
0x1201   :  { %v2096_v48 = vpop.permute.xlu1 %2095 }
0x1202   :  { %3277 = vmatmul.mubr.msk.bf16.vlgmr.msra.gmra.mrb[36].mxu0 %vm892_vm3, %v2096_v48  ;;  %3285 = vmatmul.mubr.msk.bf16.vlgmr.msra.gmra.mrb[36].mxu1 %vm892_vm3, %v2046_v45 }
0x1203   :  { %3289 = vmatpush3.bf16.msra.mxu0 %v3742_v37  ;;  %3297 = vmatpush3.bf16.msra.mxu1 %v3792_v6 }
0x1204   :  { %3290 = vmatprep.subr.bf16.mxu0 %v3562_v38  ;;  %3292 = vmatprep.mubr.msk.bf16.mxu0 %vm3563_vm2, %v3562_v38 }
0x1205   :  { %3298 = vmatprep.subr.bf16.mxu1 %v3562_v38  ;;  %3300 = vmatprep.mubr.msk.bf16.mxu1 %vm3563_vm2, %v3562_v38 }
0x1207   :  { %3291 = vmatpush3.bf16.msra.mxu0 %v3746_v39  ;;  %3299 = vmatpush3.bf16.msra.mxu1 %v3798_v7 }
0x1208   :  { %3304 = vmatprep.subr.bf16.mxu0 %v3562_v38  ;;  %3312 = vmatprep.subr.bf16.mxu1 %v3562_v38 }
0x12cd   :  { %v2084_v37 = vpop.f32.mrb[32].mxu1 }
0x12ce   :  { %v2091_v46 = vrot.slane %v2084_v37, 4  ;;  %v3270_v49 = vpop.f32.mrb[33].mxu1 }
0x12cf   :  { %v2087_v47 = vpop.f32.mrb[34].mxu1 }
0x12d0   :  { %v2093_v51 = vadd.f32 %v2091_v46, %v3779_v55  ;;  %v3271_v53 = vpop.f32.mrb[35].mxu1 }
0x12d2   :  { %3451 = vtanh.f32 %v2093_v51  ;;  %v3015_v2 = vmul.f32 -1.442695, %v2093_v51 }
0x12d5   :  { %v2134_v52 = vpop.f32.mrb[36].mxu0  ;;  %v2174_v50 = vpop.f32.mrb[36].mxu1 }
0x12d6   :  { %v2175_v54 = vadd.f32 %v2174_v50, %v2134_v52  ;;  %v3278_v58 = vpop.f32.mrb[37].mxu0  ;;  %v3286_v59 = vpop.f32.mrb[37].mxu1 }
0x12d7   :  { %v2137_v39 = vpop.f32.mrb[38].mxu0  ;;  %v2177_v56 = vpop.f32.mrb[38].mxu1 }
0x12d8   :  { %v2180_v60 = vadd.f32 %v3735_v28, %v2175_v54  ;;  %v3279_v61 = vpop.f32.mrb[39].mxu0  ;;  %v3287_v62 = vpop.f32.mrb[39].mxu1 }
0x12da   :  { %3453 = vtanh.f32 %v2180_v60  ;;  %v3014_v1 = vmul.f32 -1.442695, %v2180_v60 }
0x12db   :  { %3455 = vpow2.f32 %v3015_v2 }
0x12dc   :  { %v3452_v63 = vpop.eup %3451  ;;  %3457 = vpow2.f32 %v3014_v1 }
0x12dd   :  { %2221 = vrot.lane.b32.xlu0 %v3452_v63, %s3565_s16 }
0x12e4   :  { %v3454_v0 = vpop.eup %3453 }
0x12e5   :  { %2190 = vrot.lane.b32.xlu1 %v3454_v0, %s3565_s16  ;;  %v3456_v3 = vpop.eup %3455 }
0x12e6   :  { %v2212_v4 = vadd.f32 1.0, %v3456_v3  ;;  %v3458_v5 = vpop.eup %3457 }
0x12e7   :  { %v2184_v8 = vadd.f32 1.0, %v3458_v5 }
0x12e8   :  { %3459 = vrcp.f32 %v2212_v4 }
0x12e9   :  { %3461 = vrcp.f32 %v2184_v8 }
0x12f2   :  { %v3460_v9 = vpop.eup %3459 }
0x12f3   :  { %v3462_v14 = vpop.eup %3461  ;;  %v2219_v18 = vmul.f32 %v3460_v9, %v2217_v17 }
0x12f4   :  { %v2188_v21 = vmul.f32 %v3462_v14, %v4014_v30 }
0x134f   :  { %v2222_v10 = vpop.permute.xlu0 %2221 }
0x1350   :  { %v2224_v12 = vmul.f32 %v3460_v9, %v2222_v10 }
0x1352   :  { %2226 = vrot.lane.b32.xlu0 %v2224_v12, %s3566_s4 }
0x1357   :  { %v2191_v15 = vpop.permute.xlu1 %2190 }
0x1358   :  { %v2193_v16 = vmul.f32 %v3462_v14, %v2191_v15 }
0x135a   :  { %2195 = vrot.lane.b32.xlu1 %v2193_v16, %s3566_s4 }
0x13c4   :  { %v2227_v19 = vpop.permute.xlu0 %2226 }
0x13c5   :  { %v4053_v20 = vadd.f32 %v2227_v19, %v2219_v18 }
0x13c7   :  { %3463 = vtanh.f32 %v4053_v20  ;;  %v2412_v2 = vrot.slane %v4053_v20, 6 }
0x13cc   :  { %v2196_v22 = vpop.permute.xlu1 %2195 }
0x13cd   :  { %v4057_v23 = vadd.f32 %v2196_v22, %v2188_v21 }
0x13cf   :  { %3465 = vtanh.f32 %v4057_v23 }
0x13d1   :  { %v3464_v57 = vpop.eup %3463 }
0x13d2   :  { %2232 = vrot.lane.b32.xlu0 %v3464_v57, %s3565_s16 }
0x13d9   :  { %v3466_v24 = vpop.eup %3465 }
0x13da   :  { %2201 = vrot.lane.b32.xlu1 %v3466_v24, %s3565_s16 }
0x1444   :  { %v2233_v25 = vpop.permute.xlu0 %2232 }
0x1445   :  { %v2235_v26 = vmul.f32 %v3460_v9, %v2233_v25 }
0x1447   :  { %v2236_v27 = vpack.c.bf16 %v2235_v26, %v2235_v26 }
0x1449   :  { %v2239_v29 = vrot.slane %v2236_v27, 2 }
0x144b   :  { %2240 = vrot.lane.b32.xlu0 %v2239_v29, %s3566_s4 }
0x144c   :  { %v2202_v30 = vpop.permute.xlu1 %2201 }
0x144d   :  { %v2204_v31 = vmul.f32 %v3462_v14, %v2202_v30 }
0x144f   :  { %v4065_v32 = vsel %vm2205_vm9, %v2204_v31, %v4022_v43  ;;  %v2237_v33 = vpack.c.bf16 %v2204_v31, %v2204_v31 }
0x1451   :  { %2290 = vrot.lane.b32.xlu1 %v2237_v33, %s3566_s4 }
0x14bd   :  { %v2241_v34 = vpop.permute.xlu0 %2240 }
0x14be   :  { %3293 = vmatmul.mubr.msk.bf16.vlgmr.msra.gmra.mrb[40].mxu0 %vm892_vm3, %v2241_v34 }
0x14bf   :  { %3305 = vmatpush3.bf16.msra.mxu0 %v3811_v11  ;;  %3308 = vmatprep.mubr.msk.bf16.mxu0 %vm3563_vm2, %v3562_v38 }
0x14c0   :  { %3306 = vmatprep.subr.bf16.mxu0 %v3562_v38 }
0x14c3   :  { %3307 = vmatpush3.bf16.msra.mxu0 %v3817_v13  ;;  %v2291_v35 = vpop.permute.xlu1 %2290 }
0x14c4   :  { %3301 = vmatmul.mubr.msk.bf16.vlgmr.msra.gmra.mrb[40].mxu1 %vm892_vm3, %v2291_v35  ;;  %3320 = vmatprep.subr.bf16.mxu0 %v3562_v38 }
0x14c5   :  { %3313 = vmatpush3.bf16.msra.mxu1 %v3792_v6  ;;  %3316 = vmatprep.mubr.msk.bf16.mxu1 %vm3563_vm2, %v3562_v38 }
0x14c6   :  { %3309 = vmatmul.mubr.msk.bf16.vlgmr.msra.gmra.mrb[44].mxu0 %vm892_vm3, %v2241_v34  ;;  %3314 = vmatprep.subr.bf16.mxu1 %v3562_v38 }
0x14c7   :  { %3321 = vmatpush3.bf16.msra.mxu0 %v3811_v11  ;;  %3324 = vmatprep.mubr.msk.bf16.mxu0 %vm3563_vm2, %v3562_v38 }
0x14c8   :  { %3322 = vmatprep.subr.bf16.mxu0 %v3562_v38 }
0x14c9   :  { %3315 = vmatpush3.bf16.msra.mxu1 %v3798_v7 }
0x14cb   :  { %3323 = vmatpush3.bf16.msra.mxu0 %v3817_v13 }
0x1591   :  { %v2279_v41 = vpop.f32.mrb[40].mxu0 }
0x1592   :  { %v2286_v6 = vrot.slane %v2279_v41, 2  ;;  %v3294_v40 = vpop.f32.mrb[41].mxu0 }
0x1593   :  { %v2282_v42 = vpop.f32.mrb[42].mxu0 }
0x1594   :  { %v2288_v43 = vadd.f32 %v2286_v6, %v3779_v55  ;;  %v3295_v44 = vpop.f32.mrb[43].mxu0 }
0x1596   :  { %3467 = vtanh.f32 %v2288_v43  ;;  %v3020_v55 = vmul.f32 -1.442695, %v2288_v43 }
0x1597   :  { %v2329_v45 = vpop.f32.mrb[40].mxu1 }
0x1598   :  { %v3302_v48 = vpop.f32.mrb[41].mxu1 }
0x1599   :  { %v2332_v11 = vpop.f32.mrb[42].mxu1  ;;  %v2369_v37 = vpop.f32.mrb[44].mxu0  ;;  %v2556_v48 = vld [vmem:[%s4148_s9 + $0x8] sm:$0xff] }
0x159a   :  { %v2370_v46 = vadd.f32 %v2369_v37, %v2329_v45  ;;  %v3303_v49 = vpop.f32.mrb[43].mxu1  ;;  %v3310_v47 = vpop.f32.mrb[45].mxu0  ;;  %v2557_v11 = vld [vmem:[%s4148_s9 + $0x10] sm:$0xff]  ;;  %v3567_v37 = vmov 0.0|0.0  }
0x159b   :  { %v2372_v51 = vpop.f32.mrb[46].mxu0  ;;  %3347 = vmatprep.subr.bf16.mxu1 %v3567_v37  ;;  %v2558_v49 = vld [vmem:[%s4148_s9 + $0x18] sm:$0xff] }
0x159c   :  { %v2375_v7 = vadd.f32 %v3735_v28, %v2370_v46  ;;  %v3311_v53 = vpop.f32.mrb[47].mxu0  ;;  %v3351_v47 = vpack.c.bf16 %v2558_v49, %v2557_v11 }
0x159e   :  { %3469 = vtanh.f32 %v2375_v7  ;;  %v3019_v50 = vmul.f32 -1.442695, %v2375_v7 }
0x159f   :  { %3471 = vpow2.f32 %v3020_v55  ;;  %v3024_v55 = vld [vmem:[%s4149_s10] ss:$0 sm:$0xff] }
0x15a0   :  { %v3468_v13 = vpop.eup %3467  ;;  %3473 = vpow2.f32 %v3019_v50 }
0x15a1   :  { %2416 = vrot.lane.b32.xlu0 %v3468_v13, %s3565_s16 }
0x15a8   :  { %v3470_v52 = vpop.eup %3469 }
0x15a9   :  { %2385 = vrot.lane.b32.xlu1 %v3470_v52, %s3565_s16  ;;  %v3472_v54 = vpop.eup %3471 }
0x15aa   :  { %v2407_v58 = vadd.f32 1.0, %v3472_v54  ;;  %v3474_v59 = vpop.eup %3473 }
0x15ab   :  { %v2379_v39 = vadd.f32 1.0, %v3474_v59 }
0x15ac   :  { %3475 = vrcp.f32 %v2407_v58 }
0x15ad   :  { %3477 = vrcp.f32 %v2379_v39 }
0x15b6   :  { %v3476_v56 = vpop.eup %3475 }
0x15b7   :  { %v3478_v62 = vpop.eup %3477  ;;  %v2414_v1 = vmul.f32 %v3476_v56, %v2412_v2 }
0x15b8   :  { %v2383_v5 = vmul.f32 %v3478_v62, %v4057_v23 }
0x1613   :  { %v2417_v60 = vpop.permute.xlu0 %2416 }
0x1614   :  { %v2419_v61 = vmul.f32 %v3476_v56, %v2417_v60 }
0x1616   :  { %2421 = vrot.lane.b32.xlu0 %v2419_v61, %s3566_s4 }
0x161b   :  { %v2386_v63 = vpop.permute.xlu1 %2385 }
0x161c   :  { %v2388_v0 = vmul.f32 %v3478_v62, %v2386_v63 }
0x161e   :  { %2390 = vrot.lane.b32.xlu1 %v2388_v0, %s3566_s4 }
0x1688   :  { %v2422_v3 = vpop.permute.xlu0 %2421 }
0x1689   :  { %v2424_v4 = vadd.f32 %v2422_v3, %v2414_v1 }
0x168b   :  { %3479 = vtanh.f32 %v2424_v4 }
0x1690   :  { %v2391_v8 = vpop.permute.xlu1 %2390 }
0x1691   :  { %v2393_v9 = vadd.f32 %v2391_v8, %v2383_v5 }
0x1693   :  { %3481 = vtanh.f32 %v2393_v9 }
0x1695   :  { %v3480_v10 = vpop.eup %3479 }
0x1696   :  { %2427 = vrot.lane.b32.xlu0 %v3480_v10, %s3565_s16 }
0x169d   :  { %v3482_v12 = vpop.eup %3481 }
0x169e   :  { %2396 = vrot.lane.b32.xlu1 %v3482_v12, %s3565_s16 }
0x1708   :  { %v2428_v14 = vpop.permute.xlu0 %2427 }
0x1709   :  { %v2430_v15 = vmul.f32 %v3476_v56, %v2428_v14 }
0x170b   :  { %v2431_v16 = vpack.c.bf16 %v2430_v15, %v2430_v15 }
0x170d   :  { %v2480_v17 = vrot.slane %v2431_v16, 3 }
0x170f   :  { %2481 = vrot.lane.b32.xlu1 %v2480_v17, %s3566_s4 }
0x1710   :  { %v2397_v18 = vpop.permute.xlu1 %2396 }
0x1711   :  { %v2399_v19 = vmul.f32 %v3478_v62, %v2397_v18 }
0x1713   :  { %v2432_v20 = vpack.c.bf16 %v2399_v19, %v2399_v19  ;;  %v2403_v21 = vsel %vm2400_vm10, %v2399_v19, %v4065_v32 }
0x1715   :  { %2434 = vrot.lane.b32.xlu0 %v2432_v20, %s3566_s4 }
0x1781   :  { %v2482_v22 = vpop.permute.xlu1 %2481 }
0x1782   :  { %3325 = vmatmul.mubr.msk.bf16.vlgmr.msra.gmra.mrb[48].mxu0 %vm892_vm3, %v2482_v22 }
0x1787   :  { %v2435_v23 = vpop.permute.xlu0 %2434 }
0x1788   :  { %3317 = vmatmul.mubr.msk.bf16.vlgmr.msra.gmra.mrb[44].mxu1 %vm892_vm3, %v2435_v23 }
0x1789   :  { %3336 = vmatprep.mubr.msk.f32.mxu1 %vm3563_vm2, %v3562_v38 }
0x1855   :  { %v2520_v57 = vpop.f32.mrb[48].mxu0 }
0x1856   :  { %v3326_v24 = vpop.f32.mrb[49].mxu0 }
0x1857   :  { %v2523_v25 = vpop.f32.mrb[50].mxu0 }
0x1858   :  { %v3327_v26 = vpop.f32.mrb[51].mxu0 }
0x185b   :  { %v2473_v27 = vpop.f32.mrb[44].mxu1 }
0x185c   :  { %v2521_v29 = vadd.f32 %v2520_v57, %v2473_v27  ;;  %v3318_v30 = vpop.f32.mrb[45].mxu1 }
0x185d   :  { %v2476_v31 = vpop.f32.mrb[46].mxu1 }
0x185e   :  { %v2526_v32 = vadd.f32 %v3735_v28, %v2521_v29  ;;  %v3319_v33 = vpop.f32.mrb[47].mxu1  ;;  %v2555_v28 = vld [vmem:[%s4148_s9] sm:$0xff]  ;;  %s3568_s9 = smov [#allocation7]  }
0x185f   :  { %v3348_v46 = vpack.c.bf16 %v2556_v48, %v2555_v28  ;;  %s2649_s0 = sshll.u32 %s3568_s9, 4  ;;  %s2650_s0 = int_to_ptr.vmem [resolvable:$true] %s2649_s0 }
0x1860   :  { %3483 = vtanh.f32 %v2526_v32  ;;  %v3023_v35 = vmul.f32 -1.442695, %v2526_v32  ;;  %s3503_s26 = scalar_lea.vmem %s2650_s0, 32  ;;  %p3508_p6 = scmp.lt.s32.totalorder %s2650_s0, %s2650_s0 }
0x1861   :  { %3349 = vmatpush3.bf16.msra.mxu1 %v3348_v46  ;;  %p3504_p5 = scmp.ne.s32.totalorder %s2650_s0, %s3503_s26  ;;  %p3509_p7 = scmp.lt.s32.totalorder %s3503_s26, %s3503_s26 }
0x1862   :  { %3485 = vpow2.f32 %v3023_v35  ;;  %3350 = vmatprep.subr.bf16.mxu1 %v3567_v37 }
0x1863   :  { %p3510_p8 = por %p3509_p7, %p3508_p6 }
0x1865   :  { %3352 = vmatpush3.bf16.msra.mxu1 %v3351_v47  ;;  %p3511_p9 = pnand %p3510_p8, %p3504_p5 }
0x186a   :  { %v3484_v34 = vpop.eup %3483 }
0x186b   :  { %2536 = vrot.lane.b32.xlu0 %v3484_v34, %s3565_s16 }
0x186c   :  { %v3486_v41 = vpop.eup %3485 }
0x186d   :  { %v2530_v6 = vadd.f32 1.0, %v3486_v41 }
0x186f   :  { %3487 = vrcp.f32 %v2530_v6 }
0x1879   :  { %v3488_v38 = vpop.eup %3487 }
0x187a   :  { %v2534_v43 = vmul.f32 %v3488_v38, %v2393_v9 }
0x18dd   :  { %v2537_v40 = vpop.permute.xlu0 %2536 }
0x18de   :  { %v2539_v42 = vmul.f32 %v3488_v38, %v2537_v40 }
0x18e0   :  { %2541 = vrot.lane.b32.xlu1 %v2539_v42, %s3566_s4 }
0x1952   :  { %v2542_v44 = vpop.permute.xlu1 %2541 }
0x1953   :  { %v2544_v45 = vadd.f32 %v2542_v44, %v2534_v43 }
0x1955   :  { %3489 = vtanh.f32 %v2544_v45 }
0x195f   :  { %v3490_v51 = vpop.eup %3489 }
0x1960   :  { %2547 = vrot.lane.b32.xlu0 %v3490_v51, %s3565_s16 }
0x19d2   :  { %v2548_v7 = vpop.permute.xlu0 %2547 }
0x19d3   :  { %v2550_v53 = vmul.f32 %v3488_v38, %v2548_v7 }
0x19d5   :  { %v2554_v13 = vsel %vm2551_vm11, %v2550_v53, %v2403_v21 }
0x19d6   :  { %2567 = vrot.lane.b32.xlu1 %v2554_v13, %s3566_s4 }
0x1a48   :  { %v2568_v52 = vpop.permute.xlu1 %2567 }
0x1a49   :  { %3337 = vmatmul.mubr.msk.f32.vlgmr.msra.gmra.mrb[48].mxu1 %vm892_vm3, %v2568_v52 }
0x1b1c   :  { %v2637_v50 = vpop.f32.mrb[48].mxu1 }
0x1b1d   :  { %v2638_v54 = vadd.f32 %v3024_v55, %v2637_v50  ;;  %v3338_v58 = vpop.f32.mrb[49].mxu1 }
0x1b1f   :  { %2642 = vst.msk [vmem:[#allocation7] sm:$0x3] %vm2641_vm12, %v2638_v54 }
0x1b20   :  { %3514 = shalt.err (!%p3511_p9)
}
0x1b21   :  { %s3515_s28 = scalar_lea.hbm %s4150_s11, 32 }
0x1b22   :  { %p3516_p10 = scmp.ne.s32.totalorder %s4150_s11, %s3515_s28  ;;  %p3519_p11 = scmp.lt.u32.totalorder %s3515_s28, %s4150_s11 }
0x1b24   :  { %p3521_p12 = pnand %p3519_p11, %p3516_p10 }
0x1b26   :  { %3524 = shalt.err (!%p3521_p12)
}
0x1b27   :  { %2652 = dma.vmem_to_hbm [thread:$0]  %s2650_s0, 32, %s4150_s11, [#allocation5]  }
0x1b28   :  { %3559 = dma.done.wait [#allocation5], 32  }
0x1b29   :  { %3560 = vsyncadd [#allocation5], 4294967264 }
0x1b2a   :  { %2656 = vsyncpa [#allocation5], 1 }
0x1b2b   :  { %2657 = vsyncpa [#allocation6], 1 }
0x1b2c   :  { %2658 = vsyncmov [#allocation3] }
0x1b2f   :  { %s2659_s12 = vpop.sfrf %2658 }
0x1b30   :  { %p3026_p13 = scmp.ne.s32.totalorder %s2659_s12, 0 }
0x1b32   :  { %2663 = shalt.err (%p3026_p13)  }
0x1b33   :  { %2665 = vsyncmov [#allocation3 + $0x1] }
0x1b36   :  { %s2666_s13 = vpop.sfrf %2665 }
0x1b37   :  { %p3027_p0 = scmp.ne.s32.totalorder %s2666_s13, 0 }
0x1b39   :  { %2670 = shalt.err (%p3027_p0)  }
0x1b3a   :  { %2672 = vsyncmov [#allocation3 + $0x2] }
0x1b3d   :  { %s2673_s2 = vpop.sfrf %2672 }
0x1b3e   :  { %p3028_p1 = scmp.ne.s32.totalorder %s2673_s2, 0 }
0x1b40   :  { %2677 = shalt.err (%p3028_p1)  }
0x1b41   :  { %2679 = vsyncmov [#allocation3 + $0x3] }
0x1b44   :  { %s2680_s14 = vpop.sfrf %2679 }
0x1b45   :  { %p3029_p2 = scmp.ne.s32.totalorder %s2680_s14, 0 }
0x1b47   :  { %2684 = shalt.err (%p3029_p2)  }
0x1b48   :  { %2686 = vsyncmov [#allocation3 + $0x4] }
0x1b4b   :  { %s2687_s11 = vpop.sfrf %2686 }
0x1b4c   :  { %p3030_p3 = scmp.ne.s32.totalorder %s2687_s11, 0 }
0x1b4e   :  { %2691 = shalt.err (%p3030_p3)  }
0x1b4f   :  { %2693 = vsyncmov [#allocation3 + $0x5] }
0x1b52   :  { %s2694_s3 = vpop.sfrf %2693 }
0x1b53   :  { %p3031_p4 = scmp.ne.s32.totalorder %s2694_s3, 0 }
0x1b55   :  { %2698 = shalt.err (%p3031_p4)  }
0x1b56   :  { %2700 = vsyncmov [#allocation3 + $0x6] }
0x1b59   :  { %s2701_s15 = vpop.sfrf %2700 }
0x1b5a   :  { %p3032_p5 = scmp.ne.s32.totalorder %s2701_s15, 0 }
0x1b5c   :  { %2705 = shalt.err (%p3032_p5)  }
0x1b5d   :  { %2707 = vsyncmov [#allocation3 + $0x7] }
0x1b60   :  { %s2708_s16 = vpop.sfrf %2707 }
0x1b61   :  { %p3033_p6 = scmp.ne.s32.totalorder %s2708_s16, 0 }
0x1b63   :  { %2712 = shalt.err (%p3033_p6)  }
0x1b64   :  { %2714 = vsyncmov [#allocation3 + $0x8] }
0x1b67   :  { %s2715_s4 = vpop.sfrf %2714 }
0x1b68   :  { %p3034_p7 = scmp.ne.s32.totalorder %s2715_s4, 0 }
0x1b6a   :  { %2719 = shalt.err (%p3034_p7)  }
0x1b6b   :  { %2721 = vsyncmov [#allocation3 + $0x9] }
0x1b6e   :  { %s2722_s17 = vpop.sfrf %2721 }
0x1b6f   :  { %p3035_p8 = scmp.ne.s32.totalorder %s2722_s17, 0 }
0x1b71   :  { %2726 = shalt.err (%p3035_p8)  }
0x1b72   :  { %2728 = vsyncmov [#allocation3 + $0xa] }
0x1b75   :  { %s2729_s18 = vpop.sfrf %2728 }
0x1b76   :  { %p3036_p9 = scmp.ne.s32.totalorder %s2729_s18, 0 }
0x1b78   :  { %2733 = shalt.err (%p3036_p9)  }
0x1b79   :  { %2735 = vsyncmov [#allocation3 + $0xb] }
0x1b7c   :  { %s2736_s19 = vpop.sfrf %2735 }
0x1b7d   :  { %p3037_p10 = scmp.ne.s32.totalorder %s2736_s19, 0 }
0x1b7f   :  { %2740 = shalt.err (%p3037_p10)  }
0x1b80   :  { %2742 = vsyncmov [#allocation3 + $0xc] }
0x1b83   :  { %s2743_s20 = vpop.sfrf %2742 }
0x1b84   :  { %p3038_p11 = scmp.ne.s32.totalorder %s2743_s20, 0 }
0x1b86   :  { %2747 = shalt.err (%p3038_p11)  }
0x1b87   :  { %2749 = vsyncmov [#allocation3 + $0xd] }
0x1b8a   :  { %s2750_s5 = vpop.sfrf %2749 }
0x1b8b   :  { %p3039_p12 = scmp.ne.s32.totalorder %s2750_s5, 0 }
0x1b8d   :  { %2754 = shalt.err (%p3039_p12)  }
0x1b8e   :  { %2756 = vsyncmov [#allocation3 + $0xe] }
0x1b91   :  { %s2757_s21 = vpop.sfrf %2756 }
0x1b92   :  { %p3040_p13 = scmp.ne.s32.totalorder %s2757_s21, 0 }
0x1b94   :  { %2761 = shalt.err (%p3040_p13)  }
0x1b95   :  { %2763 = vsyncmov [#allocation3 + $0xf] }
0x1b98   :  { %s2764_s22 = vpop.sfrf %2763 }
0x1b99   :  { %p3041_p0 = scmp.ne.s32.totalorder %s2764_s22, 0 }
0x1b9b   :  { %2768 = shalt.err (%p3041_p0)  }

</bundles_post_ra>
